<compile_context>
chip_gen: v6e
topology: v6e:2x2x1
jax: 0.10.0
libtpu: 0.0.40
codegen_flags: <defaults>
</compile_context>

<pallas_src>
import functools

import jax
import jax.numpy as jnp
import numpy as np
from jax.experimental import pallas as pl
from jax.experimental.pallas import tpu as pltpu


def _l2_normalize(x):
    # F.normalize(x, p=2, dim=-1, eps=1e-12) == x * rsqrt(max(sum(x^2), 1e-24))
    ss = jnp.sum(x * x, axis=-1, keepdims=True)
    return x * jax.lax.rsqrt(jnp.maximum(ss, 1e-24))


def _fused_item_conv_kernel(b_ref, a_ref, emb_hbm_ref, emb_row_ref, o_ref,
                            *scratch, a_resident, tm, n_pad, n_slabs):
    """Grid = (layers, n_row_blocks); both axes sequential ("arbitrary").

    b_ref       : (layers+1,) f32 in SMEM
    a_ref       : resident: (n_pad, n_pad) bf16 HBM ref (pl.ANY)
                  streamed: (tm, n_pad) bf16 VMEM row tile
    emb_hbm_ref : (n_pad, d_pad) bf16 HBM ref (pl.ANY), E_0 source for the DMA
    emb_row_ref : (tm, d_pad) f32 row tile of E_0 (layer-0 acc init only)
    o_ref       : (tm, d_pad) f32 output tile
    scratch     : [a_vmem?] + [e_buf (n_slabs*n_pad, d_pad) bf16,
                               acc (n_pad, d_pad) f32, dma sems (2,)]
    """
    if a_resident:
        a_vmem, e_buf, acc_ref, sem = scratch
    else:
        e_buf, acc_ref, sem = scratch
        a_vmem = None

    l = pl.program_id(0)            # propagation step producing E_{l+1}
    i = pl.program_id(1)            # row-block index
    n_layers = pl.num_programs(0)
    row = pl.multiple_of(i * tm, tm)

    e0_off = (n_slabs - 1) * n_pad  # static slab offset that holds E_0

    # One-time staging at the very first grid step: E_0 (bf16) -> e_buf slab,
    # and (resident path) the full adjacency HBM -> VMEM, single-buffered.
    @pl.when((l == 0) & (i == 0))
    def _():
        emb_cp = pltpu.make_async_copy(
            emb_hbm_ref, e_buf.at[e0_off:e0_off + n_pad, :], sem.at[0])
        emb_cp.start()
        if a_resident:
            a_cp = pltpu.make_async_copy(a_ref, a_vmem, sem.at[1])
            a_cp.start()
            a_cp.wait()
        emb_cp.wait()

    # Layer-0 accumulator init from the full-precision (f32) embedding rows.
    @pl.when(l == 0)
    def _():
        acc_ref[pl.ds(row, tm), :] = b_ref[0] * _l2_normalize(emb_row_ref[...])

    # E_{l+1}[row block] = A[row block, :] @ E_l   (bf16 x bf16 -> f32 on MXU)
    if n_slabs == 1:
        src_off = 0
    else:
        src_off = pl.multiple_of(((l + 1) % n_slabs) * n_pad, tm)
    e_prev = e_buf[pl.ds(src_off, n_pad), :]

    if a_resident:
        a_tile = a_vmem[pl.ds(row, tm), :]
    else:
        a_tile = a_ref[...]
    new_e = jnp.dot(a_tile, e_prev, preferred_element_type=jnp.float32)

    # Keep E_{l+1} around only if a later layer will read it.
    @pl.when(l < n_layers - 1)
    def _():
        dst_off = pl.multiple_of((l % n_slabs) * n_pad + i * tm, tm)
        e_buf[pl.ds(dst_off, tm), :] = new_e.astype(e_buf.dtype)

    upd = acc_ref[pl.ds(row, tm), :] + b_ref[l + 1] * _l2_normalize(new_e)
    acc_ref[pl.ds(row, tm), :] = upd

    # Only the last layer's accumulator is the answer; skip earlier stores.
    @pl.when(l == n_layers - 1)
    def _():
        o_ref[...] = upd.astype(o_ref.dtype)


def _norm_scale_kernel(b_ref, x_ref, o_ref):
    # Degenerate layers == 0 path: out = b[0] * normalize(E_0).
    o_ref[...] = (b_ref[0] * _l2_normalize(x_ref[...])).astype(o_ref.dtype)


def _vmem_budget_bytes():
    """Generation-aware VMEM budget: physical capacity minus headroom."""
    try:
        cap = int(pltpu.get_tpu_info().vmem_capacity_bytes)
    except Exception:
        cap = 64 * 1024 * 1024          # conservative fallback (v7x-sized)
    # ~112 MiB on v5e/v6e (128 MiB physical), ~56 MiB on v7x (64 MiB physical)
    return max(32 * 1024 * 1024, cap - max(8 * 1024 * 1024, cap // 8))


def item_conv(adjacency, embedding, b, layers, *, tm=256, a_resident=None):
    """Full ItemConv.forward. `b` has shape (layers+1,) or (layers+1, 1, 1)."""
    N, D = embedding.shape
    b = jnp.asarray(b, jnp.float32).reshape(-1)

    n_blocks = int(pl.cdiv(N, tm))
    n_pad = n_blocks * tm
    d_pad = int(pl.cdiv(D, 128)) * 128

    emb_f32 = jnp.pad(embedding.astype(jnp.float32),
                      ((0, n_pad - N), (0, d_pad - D)))

    if layers == 0:
        out = pl.pallas_call(
            _norm_scale_kernel,
            out_shape=jax.ShapeDtypeStruct((n_pad, d_pad), jnp.float32),
            grid_spec=pltpu.PrefetchScalarGridSpec(
                num_scalar_prefetch=0,
                grid=(n_blocks,),
                in_specs=[pl.BlockSpec(memory_space=pltpu.MemorySpace.SMEM),
                          pl.BlockSpec((tm, d_pad), lambda i: (i, 0))],
                out_specs=pl.BlockSpec((tm, d_pad), lambda i: (i, 0))),
            compiler_params=pltpu.CompilerParams(
                dimension_semantics=("parallel",)),
        )(b, emb_f32)
        return out[:N, :D].astype(embedding.dtype)

    # Cast BEFORE padding so the big padded copy is materialized in bf16 only.
    adj_bf = jnp.pad(adjacency.astype(jnp.bfloat16),
                     ((0, n_pad - N), (0, n_pad - N)))
    emb_bf = emb_f32.astype(jnp.bfloat16)

    n_slabs = 2 if layers >= 2 else 1
    bytes_common = (n_slabs * n_pad * d_pad * 2     # bf16 E ping-pong
                    + n_pad * d_pad * 4             # f32 weighted-sum acc
                    + 2 * tm * d_pad * 4            # double-buffered out tiles
                    + 2 * tm * d_pad * 4)           # double-buffered emb rows
    bytes_a_resident = n_pad * n_pad * 2            # single-buffered A in VMEM
    margin = 4 * 1024 * 1024                        # matmul/normalize temps

    budget = _vmem_budget_bytes()
    if a_resident is None:
        a_resident = bytes_common + bytes_a_resident + margin <= budget

    kernel = functools.partial(_fused_item_conv_kernel,
                               a_resident=bool(a_resident), tm=tm,
                               n_pad=n_pad, n_slabs=n_slabs)

    if a_resident:
        a_spec = pl.BlockSpec(memory_space=pl.ANY)          # raw HBM, one DMA
        scratch = [pltpu.VMEM((n_pad, n_pad), jnp.bfloat16)]
        a_hbm_bytes = n_pad * n_pad * 2
    else:
        a_spec = pl.BlockSpec((tm, n_pad), lambda l, i: (i, 0))
        scratch = []
        a_hbm_bytes = layers * n_pad * n_pad * 2
    scratch += [pltpu.VMEM((n_slabs * n_pad, d_pad), jnp.bfloat16),
                pltpu.VMEM((n_pad, d_pad), jnp.float32),
                pltpu.SemaphoreType.DMA((2,))]

    cost = pl.CostEstimate(
        flops=int(2 * layers * n_pad * n_pad * d_pad),
        transcendentals=int((layers + 1) * n_pad),
        bytes_accessed=int(a_hbm_bytes
                           + n_pad * d_pad * 2              # E_0 bf16 DMA
                           + layers * n_pad * d_pad * 4     # emb-row restream
                           + layers * n_pad * d_pad * 4))   # output writebacks

    out = pl.pallas_call(
        kernel,
        out_shape=jax.ShapeDtypeStruct((n_pad, d_pad), jnp.float32),
        grid_spec=pltpu.PrefetchScalarGridSpec(
            num_scalar_prefetch=0,
            grid=(layers, n_blocks),
            in_specs=[
                pl.BlockSpec(memory_space=pltpu.MemorySpace.SMEM),   # b
                a_spec,                                              # A
                pl.BlockSpec(memory_space=pl.ANY),                   # E_0 bf16
                pl.BlockSpec((tm, d_pad), lambda l, i: (i, 0)),      # E_0 f32
            ],
            out_specs=pl.BlockSpec((tm, d_pad), lambda l, i: (i, 0)),
            scratch_shapes=scratch),
        # Both axes must stay sequential: layers are a recurrence and every
        # row block of layer l+1 reads ALL rows of E_l from the shared scratch.
        compiler_params=pltpu.CompilerParams(
            dimension_semantics=("arbitrary", "arbitrary"),
            vmem_limit_bytes=int(budget)),
        cost_estimate=cost,
    )(b, adj_bf, emb_bf, emb_f32)

    return out[:N, :D].astype(embedding.dtype)


# ------------------------------ pure-JAX reference ---------------------------
def item_conv_ref(adjacency, embedding, b, layers):
    outs = [embedding]
    x = embedding
    for _ in range(layers):
        x = adjacency @ x
        outs.append(x)
    stacked = jnp.stack(outs, axis=0)
    norm = jnp.maximum(
        jnp.sqrt(jnp.sum(stacked * stacked, axis=-1, keepdims=True)), 1e-12)
    b = jnp.asarray(b, jnp.float32).reshape(-1)
    return jnp.sum(b[:, None, None] * (stacked / norm), axis=0)


if __name__ == "__main__":
    layers = 3
    n_nodes = 500      # deliberately not a multiple of the 256 row tile
    emb_size = 100     # module default; padded to 128 lanes inside the kernel

    key = jax.random.PRNGKey(0)
    k_adj, k_emb = jax.random.split(key)

    # Row-normalized random adjacency (like D^-1 A in session-graph models).
    adj_raw = jax.random.uniform(k_adj, (n_nodes, n_nodes), jnp.float32)
    adjacency = adj_raw / jnp.sum(adj_raw, axis=-1, keepdims=True)

    embedding = jax.random.normal(k_emb, (n_nodes, emb_size), jnp.float32)

    # Parameter b: shape (layers+1, 1, 1) in the module, init ones_.
    b = jnp.ones((layers + 1, 1, 1), jnp.float32)

    ref = item_conv_ref(adjacency, embedding, b, layers)

    # Path 1: VMEM-resident adjacency (auto-selected at this size).
    out_res = jax.block_until_ready(item_conv(adjacency, embedding, b, layers))
    np.testing.assert_allclose(np.asarray(out_res), np.asarray(ref),
                               rtol=2e-2, atol=2e-2)

    # Path 2: force the HBM-streamed adjacency path (used for large N).
    out_str = jax.block_until_ready(
        item_conv(adjacency, embedding, b, layers, a_resident=False))
    np.testing.assert_allclose(np.asarray(out_str), np.asarray(ref),
                               rtol=2e-2, atol=2e-2)

    print("KERNEL_OK")
</pallas_src>

<mosaic_0001>
module attributes {stable_mosaic.version = 11 : i64} {
  func.func @_fused_item_conv_kernel(%arg0: i32, %arg1: i32, %arg2: memref<4xf32, #tpu.memory_space<smem>>, %arg3: memref<512x512xbf16, #tpu.memory_space<any>>, %arg4: memref<512x128xbf16, #tpu.memory_space<any>>, %arg5: memref<256x128xf32, #tpu.memory_space<vmem>>, %arg6: memref<256x128xf32, #tpu.memory_space<vmem>>, %arg7: memref<512x512xbf16, #tpu.memory_space<vmem>>, %arg8: memref<1024x128xbf16, #tpu.memory_space<vmem>>, %arg9: memref<512x128xf32, #tpu.memory_space<vmem>>, %arg10: memref<2x!tpu.dma_semaphore, #tpu.memory_space<semaphore_mem>>) attributes {dimension_semantics = [#tpu.dimension_semantics<arbitrary>, #tpu.dimension_semantics<arbitrary>], iteration_bounds = array<i64: 3, 2>, scalar_prefetch = 0 : i64, scratch_operands = 4 : i64, tpu.core_type = #tpu.core_type<tc>, window_params = [{transform_indices = @transform_0, window_bounds = array<i64: 4>}, {}, {}, {transform_indices = @transform_3, window_bounds = array<i64: 256, 128>}, {transform_indices = @transform_4, window_bounds = array<i64: 256, 128>}]} {
    %c256_i32 = arith.constant 256 : i32
    %0 = arith.muli %arg1, %c256_i32 : i32
    %1 = tpu.assume_multiple %0, 256 : i32
    %c0_i32 = arith.constant 0 : i32
    %2 = arith.cmpi eq, %arg0, %c0_i32 : i32
    %c0_i32_0 = arith.constant 0 : i32
    %3 = arith.cmpi eq, %arg1, %c0_i32_0 : i32
    %4 = arith.andi %2, %3 : i1
    %5 = arith.extui %4 : i1 to i32
    %c0_i32_1 = arith.constant 0 : i32
    %6 = arith.cmpi ne, %5, %c0_i32_1 : i32
    scf.if %6 {
      %c0_i32_19 = arith.constant 0 : i32
      %c512_i32_20 = arith.constant 512 : i32
      %c0_i32_21 = arith.constant 0 : i32
      %52 = tpu.memref_slice %arg8[%c512_i32_20, %c0_i32_21] : memref<1024x128xbf16, #tpu.memory_space<vmem>> -> memref<512x128xbf16, #tpu.memory_space<vmem>>
      %53 = tpu.memref_slice %arg10[%c0_i32_19] : memref<2x!tpu.dma_semaphore, #tpu.memory_space<semaphore_mem>> -> memref<1x!tpu.dma_semaphore, #tpu.memory_space<semaphore_mem>>
      %54 = tpu.memref_squeeze %53 : memref<1x!tpu.dma_semaphore, #tpu.memory_space<semaphore_mem>> -> memref<!tpu.dma_semaphore, #tpu.memory_space<semaphore_mem>>
      tpu.enqueue_dma source(%arg4 : memref<512x128xbf16, #tpu.memory_space<any>>) target(%52 : memref<512x128xbf16, #tpu.memory_space<vmem>>) target_semaphore(%54 : memref<!tpu.dma_semaphore, #tpu.memory_space<semaphore_mem>>)
      %c1_i32_22 = arith.constant 1 : i32
      %55 = tpu.memref_slice %arg10[%c1_i32_22] : memref<2x!tpu.dma_semaphore, #tpu.memory_space<semaphore_mem>> -> memref<1x!tpu.dma_semaphore, #tpu.memory_space<semaphore_mem>>
      %56 = tpu.memref_squeeze %55 : memref<1x!tpu.dma_semaphore, #tpu.memory_space<semaphore_mem>> -> memref<!tpu.dma_semaphore, #tpu.memory_space<semaphore_mem>>
      tpu.enqueue_dma source(%arg3 : memref<512x512xbf16, #tpu.memory_space<any>>) target(%arg7 : memref<512x512xbf16, #tpu.memory_space<vmem>>) target_semaphore(%56 : memref<!tpu.dma_semaphore, #tpu.memory_space<semaphore_mem>>)
      %c1_i32_23 = arith.constant 1 : i32
      %57 = tpu.memref_slice %arg10[%c1_i32_23] : memref<2x!tpu.dma_semaphore, #tpu.memory_space<semaphore_mem>> -> memref<1x!tpu.dma_semaphore, #tpu.memory_space<semaphore_mem>>
      %58 = tpu.memref_squeeze %57 : memref<1x!tpu.dma_semaphore, #tpu.memory_space<semaphore_mem>> -> memref<!tpu.dma_semaphore, #tpu.memory_space<semaphore_mem>>
      tpu.wait_dma2 semaphore(%58 : memref<!tpu.dma_semaphore, #tpu.memory_space<semaphore_mem>>) src(%arg3 : memref<512x512xbf16, #tpu.memory_space<any>>) dst(%arg7 : memref<512x512xbf16, #tpu.memory_space<vmem>>)
      %c0_i32_24 = arith.constant 0 : i32
      %c512_i32_25 = arith.constant 512 : i32
      %c0_i32_26 = arith.constant 0 : i32
      %59 = tpu.memref_slice %arg8[%c512_i32_25, %c0_i32_26] : memref<1024x128xbf16, #tpu.memory_space<vmem>> -> memref<512x128xbf16, #tpu.memory_space<vmem>>
      %60 = tpu.memref_slice %arg10[%c0_i32_24] : memref<2x!tpu.dma_semaphore, #tpu.memory_space<semaphore_mem>> -> memref<1x!tpu.dma_semaphore, #tpu.memory_space<semaphore_mem>>
      %61 = tpu.memref_squeeze %60 : memref<1x!tpu.dma_semaphore, #tpu.memory_space<semaphore_mem>> -> memref<!tpu.dma_semaphore, #tpu.memory_space<semaphore_mem>>
      tpu.wait_dma2 semaphore(%61 : memref<!tpu.dma_semaphore, #tpu.memory_space<semaphore_mem>>) src(%arg4 : memref<512x128xbf16, #tpu.memory_space<any>>) dst(%59 : memref<512x128xbf16, #tpu.memory_space<vmem>>)
    } else {
    }
    %c0_i32_2 = arith.constant 0 : i32
    %7 = arith.cmpi eq, %arg0, %c0_i32_2 : i32
    %8 = arith.extui %7 : i1 to i32
    %c0_i32_3 = arith.constant 0 : i32
    %9 = arith.cmpi ne, %8, %c0_i32_3 : i32
    scf.if %9 {
      %c0_19 = arith.constant 0 : index
      %52 = memref.load %arg2[%c0_19] : memref<4xf32, #tpu.memory_space<smem>>
      %c0_20 = arith.constant 0 : index
      %c0_21 = arith.constant 0 : index
      %53 = vector.load %arg5[%c0_20, %c0_21] : memref<256x128xf32, #tpu.memory_space<vmem>>, vector<256x128xf32>
      %54 = arith.mulf %53, %53 : vector<256x128xf32>
      %cst_22 = arith.constant dense<0.000000e+00> : vector<256xf32>
      %55 = vector.multi_reduction <add>, %54, %cst_22 [1] : vector<256x128xf32> to vector<256xf32>
      %56 = vector.shape_cast %55 : vector<256xf32> to vector<256x1xf32>
      %cst_23 = arith.constant 1.000000e-24 : f32
      %57 = vector.broadcast %cst_23 : f32 to vector<256x1xf32>
      %58 = arith.maximumf %56, %57 : vector<256x1xf32>
      %59 = math.rsqrt %58 : vector<256x1xf32>
      %60 = vector.broadcast %59 : vector<256x1xf32> to vector<256x128xf32>
      %61 = arith.mulf %53, %60 : vector<256x128xf32>
      %62 = vector.broadcast %52 : f32 to vector<256x128xf32>
      %63 = arith.mulf %62, %61 : vector<256x128xf32>
      %64 = arith.index_cast %1 : i32 to index
      %c0_24 = arith.constant 0 : index
      %65 = vector.load %arg9[%64, %c0_24] : memref<512x128xf32, #tpu.memory_space<vmem>>, vector<256x128xf32>
      tpu.vector_store %arg9[%64, %c0_24], %63 {strides = array<i32>} : memref<512x128xf32, #tpu.memory_space<vmem>>, vector<256x128xf32>,
    } else {
    }
    %c1_i32 = arith.constant 1 : i32
    %10 = arith.addi %arg0, %c1_i32 : i32
    %c2_i32 = arith.constant 2 : i32
    %c0_i32_4 = arith.constant 0 : i32
    %11 = arith.cmpi eq, %c2_i32, %c0_i32_4 : i32
    %c1_i32_5 = arith.constant 1 : i32
    %12 = arith.select %11, %c1_i32_5, %c2_i32 : i32
    %13 = arith.remsi %10, %12 : i32
    %c0_i32_6 = arith.constant 0 : i32
    %14 = arith.cmpi ne, %13, %c0_i32_6 : i32
    %c0_i32_7 = arith.constant 0 : i32
    %15 = arith.cmpi slt, %13, %c0_i32_7 : i32
    %c0_i32_8 = arith.constant 0 : i32
    %16 = arith.cmpi slt, %12, %c0_i32_8 : i32
    %17 = arith.xori %15, %16 : i1
    %18 = arith.andi %17, %14 : i1
    %19 = arith.addi %13, %12 : i32
    %20 = arith.select %18, %19, %13 : i32
    %c512_i32 = arith.constant 512 : i32
    %21 = arith.muli %20, %c512_i32 : i32
    %22 = tpu.assume_multiple %21, 256 : i32
    %23 = arith.index_cast %22 : i32 to index
    %c0 = arith.constant 0 : index
    %24 = vector.load %arg8[%23, %c0] : memref<1024x128xbf16, #tpu.memory_space<vmem>>, vector<512x128xbf16>
    %25 = arith.index_cast %1 : i32 to index
    %c0_9 = arith.constant 0 : index
    %26 = vector.load %arg7[%25, %c0_9] : memref<512x512xbf16, #tpu.memory_space<vmem>>, vector<256x512xbf16>
    %cst = arith.constant dense<0.000000e+00> : vector<256x128xf32>
    %27 = tpu.matmul %26, %24, %cst {dimension_numbers = #tpu.dot_dimension_numbers<[1], [0], [0], [1], [0, 0, 1, 1], [], []>} : vector<256x512xbf16>, vector<512x128xbf16>, vector<256x128xf32> -> vector<256x128xf32>
    %c2_i32_10 = arith.constant 2 : i32
    %28 = arith.cmpi slt, %arg0, %c2_i32_10 : i32
    %29 = arith.extui %28 : i1 to i32
    %c0_i32_11 = arith.constant 0 : i32
    %30 = arith.cmpi ne, %29, %c0_i32_11 : i32
    scf.if %30 {
      %c2_i32_19 = arith.constant 2 : i32
      %c0_i32_20 = arith.constant 0 : i32
      %52 = arith.cmpi eq, %c2_i32_19, %c0_i32_20 : i32
      %c1_i32_21 = arith.constant 1 : i32
      %53 = arith.select %52, %c1_i32_21, %c2_i32_19 : i32
      %54 = arith.remsi %arg0, %53 : i32
      %c0_i32_22 = arith.constant 0 : i32
      %55 = arith.cmpi ne, %54, %c0_i32_22 : i32
      %c0_i32_23 = arith.constant 0 : i32
      %56 = arith.cmpi slt, %54, %c0_i32_23 : i32
      %c0_i32_24 = arith.constant 0 : i32
      %57 = arith.cmpi slt, %53, %c0_i32_24 : i32
      %58 = arith.xori %56, %57 : i1
      %59 = arith.andi %58, %55 : i1
      %60 = arith.addi %54, %53 : i32
      %61 = arith.select %59, %60, %54 : i32
      %c512_i32_25 = arith.constant 512 : i32
      %62 = arith.muli %61, %c512_i32_25 : i32
      %c256_i32_26 = arith.constant 256 : i32
      %63 = arith.muli %arg1, %c256_i32_26 : i32
      %64 = arith.addi %62, %63 : i32
      %65 = tpu.assume_multiple %64, 256 : i32
      %66 = arith.truncf %27 : vector<256x128xf32> to vector<256x128xbf16>
      %67 = arith.index_cast %65 : i32 to index
      %c0_27 = arith.constant 0 : index
      %68 = vector.load %arg8[%67, %c0_27] : memref<1024x128xbf16, #tpu.memory_space<vmem>>, vector<256x128xbf16>
      tpu.vector_store %arg8[%67, %c0_27], %66 {strides = array<i32>} : memref<1024x128xbf16, #tpu.memory_space<vmem>>, vector<256x128xbf16>,
    } else {
    }
    %31 = arith.index_cast %1 : i32 to index
    %c0_12 = arith.constant 0 : index
    %32 = vector.load %arg9[%31, %c0_12] : memref<512x128xf32, #tpu.memory_space<vmem>>, vector<256x128xf32>
    %c1_i32_13 = arith.constant 1 : i32
    %33 = arith.addi %arg0, %c1_i32_13 : i32
    %34 = arith.index_cast %33 : i32 to index
    %35 = memref.load %arg2[%34] : memref<4xf32, #tpu.memory_space<smem>>
    %36 = arith.mulf %27, %27 : vector<256x128xf32>
    %cst_14 = arith.constant dense<0.000000e+00> : vector<256xf32>
    %37 = vector.multi_reduction <add>, %36, %cst_14 [1] : vector<256x128xf32> to vector<256xf32>
    %38 = vector.shape_cast %37 : vector<256xf32> to vector<256x1xf32>
    %cst_15 = arith.constant 1.000000e-24 : f32
    %39 = vector.broadcast %cst_15 : f32 to vector<256x1xf32>
    %40 = arith.maximumf %38, %39 : vector<256x1xf32>
    %41 = math.rsqrt %40 : vector<256x1xf32>
    %42 = vector.broadcast %41 : vector<256x1xf32> to vector<256x128xf32>
    %43 = arith.mulf %27, %42 : vector<256x128xf32>
    %44 = vector.broadcast %35 : f32 to vector<256x128xf32>
    %45 = arith.mulf %44, %43 : vector<256x128xf32>
    %46 = arith.addf %32, %45 : vector<256x128xf32>
    %47 = arith.index_cast %1 : i32 to index
    %c0_16 = arith.constant 0 : index
    %48 = vector.load %arg9[%47, %c0_16] : memref<512x128xf32, #tpu.memory_space<vmem>>, vector<256x128xf32>
    tpu.vector_store %arg9[%47, %c0_16], %46 {strides = array<i32>} : memref<512x128xf32, #tpu.memory_space<vmem>>, vector<256x128xf32>,
    %c2_i32_17 = arith.constant 2 : i32
    %49 = arith.cmpi eq, %arg0, %c2_i32_17 : i32
    %50 = arith.extui %49 : i1 to i32
    %c0_i32_18 = arith.constant 0 : i32
    %51 = arith.cmpi ne, %50, %c0_i32_18 : i32
    scf.if %51 {
      %c0_19 = arith.constant 0 : index
      %c0_20 = arith.constant 0 : index
      %52 = vector.load %arg6[%c0_19, %c0_20] : memref<256x128xf32, #tpu.memory_space<vmem>>, vector<256x128xf32>
      tpu.vector_store %arg6[%c0_19, %c0_20], %46 {strides = array<i32>} : memref<256x128xf32, #tpu.memory_space<vmem>>, vector<256x128xf32>,
    } else {
    }
    return
  }
  func.func @transform_0(%arg0: i32, %arg1: i32) -> i32 {
    %c0_i32 = arith.constant 0 : i32
    %c0_i32_0 = arith.constant 0 : i32
    return %c0_i32 : i32
  }
  func.func @transform_3(%arg0: i32, %arg1: i32) -> (i32, i32) {
    %c0_i32 = arith.constant 0 : i32
    %c0_i32_0 = arith.constant 0 : i32
    return %arg1, %c0_i32 : i32, i32
  }
  func.func @transform_4(%arg0: i32, %arg1: i32) -> (i32, i32) {
    %c0_i32 = arith.constant 0 : i32
    %c0_i32_0 = arith.constant 0 : i32
    return %arg1, %c0_i32 : i32, i32
  }
}

</mosaic_0001>

<bundles_post_ra>
// kernel: tpu_custom_call.1
= control target key start
LH: loop header
LB: loop body
LE: loop exit
PB: predicated region body
PF: predicated region fallthrough
CT: control target
= control target key end

     0   :  { %s4319_s0 = inlined_call_operand.hbm [shape: f32[4], index: 0, kind: input, shape index: {}]   ;;  %s4320_s1 = inlined_call_operand.hbm [shape: bf16[512,512], index: 1, kind: input, shape index: {}]   ;;  %s4321_s2 = inlined_call_operand.hbm [shape: bf16[512,128], index: 2, kind: input, shape index: {}]   ;;  %s4322_s3 = inlined_call_operand.hbm [shape: f32[512,128], index: 3, kind: input, shape index: {}]   ;;  %s4323_s4 = inlined_call_operand.hbm [shape: f32[512,128], index: 4, kind: output, shape index: {}]  }
   0x1   :  { %4327 = sst [smem:[#allocation26_spill]] %s4319_s0 }
   0x2   :  { %9 = vsyncpa [#allocation9], 0 }
   0x3   :  { %10 = vsyncpa [#allocation7], 0 }
   0x4   :  { %12 = vsyncpa [#allocation7 + $0x1], 0 }
   0x5   :  { %13 = vsyncpa [#allocation8], 0 }
   0x6   :  { %15 = vsyncpa [#allocation8 + $0x1], 0  ;;  %s3291_s15 = smov 0   ;;  %s3293_s16 = smov 0  }
   0x7   :  { %s3295_s17 = smov 0   ;;  %s3297_s18 = smov 0  }
   0x8   :  { %s3299_s19 = smov 0   ;;  %s3301_s20 = smov 0  }
   0x9   :  { %s3303_s21 = smov 0   ;;  %s3305_s22 = smov 0  }
   0xa LB: > { %s2182_s23 = sadd.s32 4294967295, %s3254_s22   ;;  %s2183_s24 = sadd.s32 4294967294, %s3254_s22   ;;  %s3254_s22 = sphi %s3305_s22, %s21_s22   ;;  %s3250_s21 = sphi %s3303_s21, %s4351_s21   ;;  %s3246_s20 = sphi %s3301_s20, %s4350_s20   ;;  %s3242_s19 = sphi %s3299_s19, %s4349_s19   ;;  %s3238_s18 = sphi %s3297_s18, %s4348_s18   ;;  %s3234_s17 = sphi %s3295_s17, %s4347_s17   ;;  %s3230_s16 = sphi %s3293_s16, %s4346_s16   ;;  %s3226_s15 = sphi %s3291_s15, %s4345_s15  }
   0xb   : > { %s61_s25 = sadd.s32 1, %s3234_s17  ;;  %p68_p0 = scmp.ne.s32.totalorder %s3234_s17, %s3230_s16 }
   0xc   : > { %p69_p1 = scmp.eq.s32.totalorder %s3254_s22, 0  ;;  %p74_p2 = scmp.ne.s32.totalorder %s3230_s16, %s3226_s15 }
   0xd   : > { %p3339_p3 = scmp.eq.s32.totalorder %s2182_s23, 0  ;;  %p98_p4 = scmp.eq.s32.totalorder %s2182_s23, 5 }
   0xe   : > { %p70_p5 = por %p69_p1, %p68_p0  ;;  %p104_p6 = scmp.eq.s32.totalorder %s2183_s24, 5 }
   0xf   : > { %p3345_p7 = por %p3339_p3, %p74_p2  ;;  %p3349_p8 = por %p98_p4, %p68_p0 }
  0x10   : > { %p3353_p9 = por %p104_p6, %p74_p2  ;;  %p2184_p10 = scmp.ge.s32.totalorder %s3254_s22, 1 }
  0x11   : > { %s4330_s28 = scalar_select %p3349_p8, 1, 0 }
  0x12   : > { %s4331_s29 = scalar_select %p3353_p9, 1, 0 }
  0x13   : > { %p111_p11 = scmp.lt.s32.totalorder %s3254_s22, 7  ;;  %p2725_p13 = scmp.lt.s32.totalorder %s3254_s22, 6 }
  0x14   : > { %4332 = sst [smem:[#allocation23_spill]] %s4331_s29  ;;  %s30_s6 = sadd.s32 1, %s3246_s20 }
  0x15   : > { %p3359_p12 = pnand %p2184_p10, %p111_p11  ;;  %p3366_p0 = pnand %p2725_p13, %p70_p5 }
  0x16   : > { %s33_s7 = sadd.s32 1, %s3250_s21  ;;  %p31_p4 = scmp.ge.s32.totalorder %s30_s6, 2 }
  0x17   : > { %p2712_p1 = pneg %p3359_p12  ;;  %s3256_s8 = smov [#allocation6]  }
  0x18   : > { %s4335_s0 = sld [smem:[#allocation26_spill]]  ;;  %s4353_s6 = smov (%p31_p4, %s30_s6), 0 }
  0x19   : > { %p2713_p2 = pnand %p2712_p1, %p3339_p3  ;;  %4336 = sst [smem:[#allocation24_spill]] %s4353_s6 }
  0x1a   : > { %s4355_s7 = smov (!%p31_p4, %s33_s7), %s3250_s21  ;;  %s58_s11 = ssub.s32 %s3246_s20, %s4353_s6 }
  0x1b   : > { %s133_s12 = sand.u32 1, %s3234_s17   ;;  %p35_p5 = scmp.ge.s32.totalorder %s4355_s7, 3 }
  0x1c   : > { %p59_p6 = scmp.eq.s32.totalorder %s58_s11, 0  ;;  %s2187_s13 = sshll.u32 %s133_s12, 8 }
  0x1d   : > { %s4357_s7 = smov (%p35_p5, %s4355_s7), 0  ;;  %s2345_s23 = sshll.u32 %s3246_s20, 12 }
  0x1e   : > { %2715 = dma.hbm_to_smem (!%p2713_p2), %s4335_s0, 16, %s3256_s8, [#allocation9]  }
  0x1f   : > { %4337 = sst [smem:[#allocation25_spill]] %s4357_s7  ;;  %s143_s8 = scalar_lea.hbm %s4322_s3, %s2345_s23 }
  0x20   : > { %s3388_s14 = scalar_select %p59_p6, %s3234_s17, %s61_s25  }
  0x21   : > { %s137_s9 = scalar_lea.vmem [#allocation10], %s2187_s13  ;;  %s134_s0 = scalar_lea.sflag [#allocation7], %s133_s12 }
  0x22   : > { %s144_s10 = sshll.u32 %s137_s9, 4  ;;  %p3068_p10 = pneg %p3366_p0  ;;  %s145_s10 = int_to_ptr.vmem [resolvable:$true] %s144_s10 }
  0x23   : > { %s3079_s6 = scalar_lea.vmem %s145_s10, 4096  ;;  %s3257_s11 = smov [#allocation10]  }
  0x24   : > { %p3080_p11 = scmp.ne.s32.totalorder %s145_s10, %s3079_s6  ;;  %s3084_s7 = sshll.u32 %s3257_s11, 4  ;;  %s3085_s7 = int_to_ptr.vmem [resolvable:$false] %s3084_s7 }
  0x25   : > { %s3086_s25 = scalar_lea.vmem %s3085_s7, 8192  ;;  %p3087_p2 = scmp.lt.s32.totalorder %s145_s10, %s3085_s7 }
  0x26   : > { %p3082_p13 = pnand %p3080_p11, %p3068_p10  ;;  %p3088_p4 = scmp.lt.s32.totalorder %s3086_s25, %s3079_s6 }
  0x28   : > { %p3083_p1 = pneg %p3082_p13  ;;  %p3089_p5 = por %p3088_p4, %p3087_p2 }
  0x2a   : > { %p3090_p6 = pnand %p3089_p5, %p3083_p1 }
  0x2c   : > { %3093 = shalt.err (!%p3090_p6)
}
  0x2d   : > { %s3258_s29 = smov 128   ;;  %s3259_s13 = smov 8  }
  0x2e   : > { %2719 = dma.hbm_to_vmem [thread:$0]  (!%p3366_p0), %s143_s8, 4096, %s145_s10, %s134_s0, %s3258_s29, %s3258_s29, %s3259_s13  }
  0x2f   : > { %156 = sbr.rel (%p3359_p12) target bundleno = 972 (0x3cc), region = 28 }
  0x34   : > { %3205 = dma.done.wait (%p3339_p3), [#allocation9], 16  }
  0x35   : > { %3207 = vsyncadd (%p3339_p3), [#allocation9], 4294967280  ;;  %s3405_s6 = sand.u32 1, %s3230_s16  }
  0x36   : > { %s2192_s7 = sshll.u32 %s3405_s6, 8  ;;  %s163_s12 = scalar_lea.sflag [#allocation7], %s3405_s6 }
  0x37   : > { %s3411_s0 = scalar_lea.vmem [#allocation10], %s2192_s7 }
  0x38   : > { %3209 = dma.done.wait (%p3345_p7), %s163_s12, 4096  }
  0x39   : > { %3211 = vsyncadd (%p3345_p7), %s163_s12, 4294963200 }
  0x3a   : > { %171 = sfence }
  0x3b   : > { %s3418_s26 = sshll.u32 %s3238_s18, 8  ;;  %p192_p3 = scmp.eq.s32.totalorder %s3242_s19, 0 }
  0x3c   : > { %p193_p12 = scmp.eq.s32.totalorder %s3238_s18, 0  ;;  %s3260_s5 = smov [#allocation3 + $0x100]  }
  0x3d   : > { %s206_s23 = sshll.u32 %s3260_s5, 4  ;;  %s3261_s24 = smov [#allocation2]   ;;  %s207_s23 = int_to_ptr.vmem [resolvable:$true] %s206_s23 }
  0x3e   : > { %p3422_p0 = pnand %p193_p12, %p192_p3  ;;  %s218_s8 = sshll.u32 %s3261_s24, 4  ;;  %s219_s8 = int_to_ptr.vmem [resolvable:$true] %s218_s8 }
  0x3f   : > { %s3105_s9 = scalar_lea.vmem %s207_s23, 4096  ;;  %s3262_s10 = smov [#allocation3]  }
  0x40   : > { %p3428_p7 = pneg %p3422_p0  ;;  %p3106_p10 = scmp.ne.s32.totalorder %s207_s23, %s3105_s9 }
  0x41   : > { %s3110_s11 = sshll.u32 %s3262_s10, 4  ;;  %s3111_s11 = int_to_ptr.vmem [resolvable:$false] %s3110_s11 }
  0x42   : > { %p3108_p11 = pnand %p3106_p10, %p3428_p7  ;;  %s3112_s25 = scalar_lea.vmem %s3111_s11, 8192 }
  0x43   : > { %p3113_p1 = scmp.lt.s32.totalorder %s207_s23, %s3111_s11  ;;  %p3114_p2 = scmp.lt.s32.totalorder %s3112_s25, %s3105_s9 }
  0x44   : > { %p3109_p13 = pneg %p3108_p11 }
  0x45   : > { %p3115_p4 = por %p3114_p2, %p3113_p1 }
  0x47   : > { %p3116_p5 = pnand %p3115_p4, %p3109_p13 }
  0x49   : > { %3119 = shalt.err (!%p3116_p5)  }
  0x4a   : > { %2706 = dma.hbm_to_vmem [thread:$0]  (!%p3422_p0), %s4321_s2, 4096, %s207_s23, [#allocation5] }
  0x4b   : > { %s3131_s12 = scalar_lea.vmem %s219_s8, 16384  ;;  %p3139_p10 = scmp.lt.s32.totalorder %s219_s8, %s219_s8 }
  0x4c   : > { %p3132_p6 = scmp.ne.s32.totalorder %s219_s8, %s3131_s12  ;;  %p3140_p11 = scmp.lt.s32.totalorder %s3131_s12, %s3131_s12 }
  0x4e   : > { %p3134_p3 = pnand %p3132_p6, %p3428_p7  ;;  %p3141_p9 = por %p3140_p11, %p3139_p10 }
  0x50   : > { %p3135_p12 = pneg %p3134_p3 }
  0x52   : > { %p3142_p8 = pnand %p3141_p9, %p3135_p12 }
  0x54   : > { %3145 = shalt.err (!%p3142_p8)  }
  0x55   : > { %2707 = dma.hbm_to_vmem [thread:$0]  (!%p3422_p0), %s4320_s1, 16384, %s219_s8, [#allocation5 + $0x1] }
  0x56   : > { %s3448_s23 = scalar_lea.vmem [#allocation11], %s2192_s7 }
  0x57   : > { %3213 = dma.done.wait (%p3428_p7), [#allocation5 + $0x1], 16384 }
  0x58   : > { %3215 = vsyncadd (%p3428_p7), [#allocation5 + $0x1], 4294950912 }
  0x59   : > { %3217 = dma.done.wait (%p3428_p7), [#allocation5], 4096 }
  0x5a   : > { %3219 = vsyncadd (%p3428_p7), [#allocation5], 4294963200  ;;  %p2195_p8 = scmp.ne.s32.totalorder %s3242_s19, 0 }
  0x5b   : > { %s232_s7 = sld [smem:[#allocation6]] (!%p2195_p8) }
  0x5c   : > { %231 = sbr.rel (%p2195_p8) target bundleno = 320 (0x140), region = 52 }
  0x61   : > { %v3460_v0 = vld [vmem:[%s3411_s0 + $0x10] sm:$0xff]  ;;  %v3463_v1 = vld [vmem:[%s3411_s0] sm:$0xff]  ;;  %v3466_v2 = vld [vmem:[%s3411_s0 + $0x18] sm:$0xff] }
  0x62   : > { %v267_v3 = vmul.f32 %v3460_v0, %v3460_v0  ;;  %v265_v4 = vmul.f32 %v3463_v1, %v3463_v1  ;;  %v3473_v5 = vld [vmem:[%s3411_s0 + $0x8] sm:$0xff]  ;;  %v268_v6 = vmul.f32 %v3466_v2, %v3466_v2  ;;  %v3483_v9 = vld [vmem:[%s3411_s0 + $0x20] sm:$0xff]  ;;  %v3490_v12 = vld [vmem:[%s3411_s0 + $0x38] sm:$0xff] }
  0x63   : > { %v266_v7 = vmul.f32 %v3473_v5, %v3473_v5  ;;  %v3480_v8 = vld [vmem:[%s3411_s0 + $0x28] sm:$0xff]  ;;  %v269_v11 = vmul.f32 %v3483_v9, %v3483_v9  ;;  %v3493_v13 = vld [vmem:[%s3411_s0 + $0x30] sm:$0xff]  ;;  %v272_v14 = vmul.f32 %v3490_v12, %v3490_v12  ;;  %v3503_v17 = vld [vmem:[%s3411_s0 + $0x40] sm:$0xff] }
  0x64   : > { %301 = vadd.xlane.f32.xlu1 %v267_v3  ;;  %297 = vadd.xlane.f32.xlu0 %v265_v4  ;;  %v270_v10 = vmul.f32 %v3480_v8, %v3480_v8  ;;  %v271_v15 = vmul.f32 %v3493_v13, %v3493_v13  ;;  %v3500_v16 = vld [vmem:[%s3411_s0 + $0x48] sm:$0xff]  ;;  %v273_v19 = vmul.f32 %v3503_v17, %v3503_v17  ;;  %v3510_v20 = vld [vmem:[%s3411_s0 + $0x58] sm:$0xff]  ;;  %v3513_v21 = vld [vmem:[%s3411_s0 + $0x50] sm:$0xff] }
  0x65   : > { %v274_v18 = vmul.f32 %v3500_v16, %v3500_v16  ;;  %v276_v22 = vmul.f32 %v3510_v20, %v3510_v20  ;;  %v275_v23 = vmul.f32 %v3513_v21, %v3513_v21  ;;  %v3520_v24 = vld [vmem:[%s3411_s0 + $0x68] sm:$0xff]  ;;  %v3523_v25 = vld [vmem:[%s3411_s0 + $0x60] sm:$0xff]  ;;  %v3530_v28 = vld [vmem:[%s3411_s0 + $0x78] sm:$0xff] }
  0x66   : > { %v278_v26 = vmul.f32 %v3520_v24, %v3520_v24  ;;  %v277_v27 = vmul.f32 %v3523_v25, %v3523_v25  ;;  %v3533_v29 = vld [vmem:[%s3411_s0 + $0x70] sm:$0xff]  ;;  %v280_v30 = vmul.f32 %v3530_v28, %v3530_v28  ;;  %v3540_v32 = vld [vmem:[%s3411_s0 + $0x88] sm:$0xff]  ;;  %v3543_v33 = vld [vmem:[%s3411_s0 + $0x80] sm:$0xff] }
  0x67   : > { %v279_v31 = vmul.f32 %v3533_v29, %v3533_v29  ;;  %v282_v34 = vmul.f32 %v3540_v32, %v3540_v32  ;;  %v281_v35 = vmul.f32 %v3543_v33, %v3543_v33  ;;  %v3550_v36 = vld [vmem:[%s3411_s0 + $0x98] sm:$0xff]  ;;  %v3553_v37 = vld [vmem:[%s3411_s0 + $0x90] sm:$0xff]  ;;  %v3560_v40 = vld [vmem:[%s3411_s0 + $0xa8] sm:$0xff] }
  0x68   : > { %303 = vadd.xlane.f32.xlu1 %v268_v6  ;;  %299 = vadd.xlane.f32.xlu0 %v266_v7  ;;  %v284_v38 = vmul.f32 %v3550_v36, %v3550_v36  ;;  %v283_v39 = vmul.f32 %v3553_v37, %v3553_v37  ;;  %v3563_v41 = vld [vmem:[%s3411_s0 + $0xa0] sm:$0xff]  ;;  %v286_v42 = vmul.f32 %v3560_v40, %v3560_v40  ;;  %v3570_v44 = vld [vmem:[%s3411_s0 + $0xb8] sm:$0xff]  ;;  %v3573_v45 = vld [vmem:[%s3411_s0 + $0xb0] sm:$0xff] }
  0x69   : > { %v285_v43 = vmul.f32 %v3563_v41, %v3563_v41  ;;  %v288_v46 = vmul.f32 %v3570_v44, %v3570_v44  ;;  %v287_v47 = vmul.f32 %v3573_v45, %v3573_v45  ;;  %v3580_v48 = vld [vmem:[%s3411_s0 + $0xc8] sm:$0xff]  ;;  %v3583_v49 = vld [vmem:[%s3411_s0 + $0xc0] sm:$0xff]  ;;  %v3590_v52 = vld [vmem:[%s3411_s0 + $0xd8] sm:$0xff] }
  0x6a   : > { %v290_v50 = vmul.f32 %v3580_v48, %v3580_v48  ;;  %v289_v51 = vmul.f32 %v3583_v49, %v3583_v49  ;;  %v3593_v53 = vld [vmem:[%s3411_s0 + $0xd0] sm:$0xff]  ;;  %v292_v54 = vmul.f32 %v3590_v52, %v3590_v52  ;;  %v3600_v56 = vld [vmem:[%s3411_s0 + $0xe8] sm:$0xff]  ;;  %v3603_v57 = vld [vmem:[%s3411_s0 + $0xe0] sm:$0xff] }
  0x6b   : > { %v291_v55 = vmul.f32 %v3593_v53, %v3593_v53  ;;  %v294_v58 = vmul.f32 %v3600_v56, %v3600_v56  ;;  %v293_v59 = vmul.f32 %v3603_v57, %v3603_v57  ;;  %v3610_v60 = vld [vmem:[%s3411_s0 + $0xf8] sm:$0xff]  ;;  %v3613_v61 = vld [vmem:[%s3411_s0 + $0xf0] sm:$0xff]  ;;  %s3626_s0 = scalar_lea.vmem [#allocation4], %s3418_s26 }
  0x6c   : > { %307 = vadd.xlane.f32.xlu1 %v270_v10  ;;  %305 = vadd.xlane.f32.xlu0 %v269_v11  ;;  %v296_v62 = vmul.f32 %v3610_v60, %v3610_v60  ;;  %v295_v63 = vmul.f32 %v3613_v61, %v3613_v61 }
  0x70   : > { %311 = vadd.xlane.f32.xlu1 %v272_v14  ;;  %309 = vadd.xlane.f32.xlu0 %v271_v15 }
  0x74   : > { %315 = vadd.xlane.f32.xlu1 %v274_v18  ;;  %313 = vadd.xlane.f32.xlu0 %v273_v19 }
  0x78   : > { %319 = vadd.xlane.f32.xlu1 %v276_v22  ;;  %317 = vadd.xlane.f32.xlu0 %v275_v23 }
  0x7c   : > { %323 = vadd.xlane.f32.xlu1 %v278_v26  ;;  %321 = vadd.xlane.f32.xlu0 %v277_v27 }
  0x80   : > { %327 = vadd.xlane.f32.xlu1 %v280_v30  ;;  %325 = vadd.xlane.f32.xlu0 %v279_v31 }
  0x84   : > { %331 = vadd.xlane.f32.xlu1 %v282_v34  ;;  %329 = vadd.xlane.f32.xlu0 %v281_v35  ;;  %v3619_v35 = vstv %s232_s7 }
  0x88   : > { %335 = vadd.xlane.f32.xlu1 %v284_v38  ;;  %333 = vadd.xlane.f32.xlu0 %v283_v39 }
  0x8c   : > { %339 = vadd.xlane.f32.xlu1 %v286_v42  ;;  %337 = vadd.xlane.f32.xlu0 %v285_v43 }
  0x90   : > { %343 = vadd.xlane.f32.xlu1 %v288_v46  ;;  %341 = vadd.xlane.f32.xlu0 %v287_v47 }
  0x94   : > { %347 = vadd.xlane.f32.xlu1 %v290_v50  ;;  %345 = vadd.xlane.f32.xlu0 %v289_v51 }
  0x98   : > { %351 = vadd.xlane.f32.xlu1 %v292_v54  ;;  %349 = vadd.xlane.f32.xlu0 %v291_v55 }
  0x9c   : > { %355 = vadd.xlane.f32.xlu1 %v294_v58  ;;  %353 = vadd.xlane.f32.xlu0 %v293_v59 }
  0xa0   : > { %359 = vadd.xlane.f32.xlu1 %v296_v62  ;;  %357 = vadd.xlane.f32.xlu0 %v295_v63 }
  0xed   : > { %v302_v3 = vpop.xlane.xlu1 %301  ;;  %v298_v4 = vpop.xlane.xlu0 %297 }
  0xee   : > { %v363_v6 = vmax.f32 %v302_v3, 1e-24  ;;  %v361_v7 = vmax.f32 %v298_v4, 1e-24 }
  0xf0   : > { %2799 = vrsqrt.f32 %v363_v6 }
  0xf1   : > { %2801 = vrsqrt.f32 %v361_v7  ;;  %v304_v10 = vpop.xlane.xlu1 %303  ;;  %v300_v11 = vpop.xlane.xlu0 %299 }
  0xf2   : > { %v364_v14 = vmax.f32 %v304_v10, 1e-24  ;;  %v362_v15 = vmax.f32 %v300_v11, 1e-24 }
  0xf4   : > { %2803 = vrsqrt.f32 %v364_v14 }
  0xf5   : > { %2805 = vrsqrt.f32 %v362_v15  ;;  %v308_v18 = vpop.xlane.xlu1 %307  ;;  %v306_v19 = vpop.xlane.xlu0 %305 }
  0xf6   : > { %v366_v22 = vmax.f32 %v308_v18, 1e-24  ;;  %v365_v23 = vmax.f32 %v306_v19, 1e-24 }
  0xf8   : > { %2807 = vrsqrt.f32 %v366_v22 }
  0xf9   : > { %2809 = vrsqrt.f32 %v365_v23  ;;  %v312_v26 = vpop.xlane.xlu1 %311  ;;  %v310_v27 = vpop.xlane.xlu0 %309 }
  0xfa   : > { %v368_v30 = vmax.f32 %v312_v26, 1e-24  ;;  %v367_v31 = vmax.f32 %v310_v27, 1e-24 }
  0xfc   : > { %2811 = vrsqrt.f32 %v368_v30 }
  0xfd   : > { %v2800_v34 = vpop.eup %2799  ;;  %2813 = vrsqrt.f32 %v367_v31  ;;  %v316_v38 = vpop.xlane.xlu1 %315 }
  0xfe   : > { %v314_v39 = vpop.xlane.xlu0 %313  ;;  %v2802_v42 = vpop.eup %2801  ;;  %v427_v43 = vmul.f32 %v2800_v34, %v3460_v0  ;;  %v370_v46 = vmax.f32 %v316_v38, 1e-24 }
  0xff   : > { %v369_v47 = vmax.f32 %v314_v39, 1e-24  ;;  %v425_v50 = vmul.f32 %v2802_v42, %v3463_v1 }
 0x100   : > { %v460_v51 = vmul.f32 %v3619_v35, %v427_v43  ;;  %2815 = vrsqrt.f32 %v370_v46 }
 0x101   : > { %v2804_v54 = vpop.eup %2803  ;;  %v458_v55 = vmul.f32 %v3619_v35, %v425_v50  ;;  %2817 = vrsqrt.f32 %v369_v47  ;;  %v320_v58 = vpop.xlane.xlu1 %319 }
 0x102   : > { %v318_v59 = vpop.xlane.xlu0 %317  ;;  %v2806_v62 = vpop.eup %2805  ;;  %493 = vst [vmem:[%s3626_s0 + $0x10] sm:$0xff] %v460_v51  ;;  %v428_v0 = vmul.f32 %v2804_v54, %v3466_v2  ;;  %v372_v63 = vmax.f32 %v320_v58, 1e-24 }
 0x103   : > { %v371_v1 = vmax.f32 %v318_v59, 1e-24  ;;  %491 = vst [vmem:[%s3626_s0] sm:$0xff] %v458_v55  ;;  %v426_v3 = vmul.f32 %v2806_v62, %v3473_v5 }
 0x104   : > { %v461_v4 = vmul.f32 %v3619_v35, %v428_v0  ;;  %2819 = vrsqrt.f32 %v372_v63 }
 0x105   : > { %v2808_v6 = vpop.eup %2807  ;;  %v459_v7 = vmul.f32 %v3619_v35, %v426_v3  ;;  %2821 = vrsqrt.f32 %v371_v1  ;;  %v324_v10 = vpop.xlane.xlu1 %323 }
 0x106   : > { %v322_v11 = vpop.xlane.xlu0 %321  ;;  %v2810_v14 = vpop.eup %2809  ;;  %494 = vst [vmem:[%s3626_s0 + $0x18] sm:$0xff] %v461_v4  ;;  %v430_v2 = vmul.f32 %v2808_v6, %v3480_v8  ;;  %v374_v15 = vmax.f32 %v324_v10, 1e-24 }
 0x107   : > { %v373_v18 = vmax.f32 %v322_v11, 1e-24  ;;  %492 = vst [vmem:[%s3626_s0 + $0x8] sm:$0xff] %v459_v7  ;;  %v429_v5 = vmul.f32 %v2810_v14, %v3483_v9 }
 0x108   : > { %v463_v19 = vmul.f32 %v3619_v35, %v430_v2  ;;  %2823 = vrsqrt.f32 %v374_v15 }
 0x109   : > { %v2812_v22 = vpop.eup %2811  ;;  %v462_v23 = vmul.f32 %v3619_v35, %v429_v5  ;;  %2825 = vrsqrt.f32 %v373_v18  ;;  %v328_v26 = vpop.xlane.xlu1 %327 }
 0x10a   : > { %v326_v27 = vpop.xlane.xlu0 %325  ;;  %v2814_v30 = vpop.eup %2813  ;;  %496 = vst [vmem:[%s3626_s0 + $0x28] sm:$0xff] %v463_v19  ;;  %v432_v8 = vmul.f32 %v2812_v22, %v3490_v12  ;;  %v376_v31 = vmax.f32 %v328_v26, 1e-24 }
 0x10b   : > { %v375_v34 = vmax.f32 %v326_v27, 1e-24  ;;  %495 = vst [vmem:[%s3626_s0 + $0x20] sm:$0xff] %v462_v23  ;;  %v431_v9 = vmul.f32 %v2814_v30, %v3493_v13 }
 0x10c   : > { %v465_v38 = vmul.f32 %v3619_v35, %v432_v8  ;;  %2827 = vrsqrt.f32 %v376_v31 }
 0x10d   : > { %v2816_v39 = vpop.eup %2815  ;;  %v464_v42 = vmul.f32 %v3619_v35, %v431_v9  ;;  %2829 = vrsqrt.f32 %v375_v34  ;;  %v332_v43 = vpop.xlane.xlu1 %331 }
 0x10e   : > { %v330_v46 = vpop.xlane.xlu0 %329  ;;  %v2818_v47 = vpop.eup %2817  ;;  %498 = vst [vmem:[%s3626_s0 + $0x38] sm:$0xff] %v465_v38  ;;  %v434_v12 = vmul.f32 %v2816_v39, %v3500_v16  ;;  %v378_v50 = vmax.f32 %v332_v43, 1e-24 }
 0x10f   : > { %v377_v51 = vmax.f32 %v330_v46, 1e-24  ;;  %497 = vst [vmem:[%s3626_s0 + $0x30] sm:$0xff] %v464_v42  ;;  %v433_v13 = vmul.f32 %v2818_v47, %v3503_v17 }
 0x110   : > { %v467_v54 = vmul.f32 %v3619_v35, %v434_v12  ;;  %2831 = vrsqrt.f32 %v378_v50 }
 0x111   : > { %v2820_v55 = vpop.eup %2819  ;;  %v466_v58 = vmul.f32 %v3619_v35, %v433_v13  ;;  %2833 = vrsqrt.f32 %v377_v51  ;;  %v336_v59 = vpop.xlane.xlu1 %335 }
 0x112   : > { %v334_v62 = vpop.xlane.xlu0 %333  ;;  %v2822_v0 = vpop.eup %2821  ;;  %500 = vst [vmem:[%s3626_s0 + $0x48] sm:$0xff] %v467_v54  ;;  %v436_v16 = vmul.f32 %v2820_v55, %v3510_v20  ;;  %v380_v63 = vmax.f32 %v336_v59, 1e-24 }
 0x113   : > { %v379_v1 = vmax.f32 %v334_v62, 1e-24  ;;  %499 = vst [vmem:[%s3626_s0 + $0x40] sm:$0xff] %v466_v58  ;;  %v435_v17 = vmul.f32 %v2822_v0, %v3513_v21 }
 0x114   : > { %v469_v3 = vmul.f32 %v3619_v35, %v436_v16  ;;  %2835 = vrsqrt.f32 %v380_v63 }
 0x115   : > { %v2824_v4 = vpop.eup %2823  ;;  %v468_v6 = vmul.f32 %v3619_v35, %v435_v17  ;;  %2837 = vrsqrt.f32 %v379_v1  ;;  %v340_v7 = vpop.xlane.xlu1 %339 }
 0x116   : > { %v338_v10 = vpop.xlane.xlu0 %337  ;;  %v2826_v11 = vpop.eup %2825  ;;  %502 = vst [vmem:[%s3626_s0 + $0x58] sm:$0xff] %v469_v3  ;;  %v438_v20 = vmul.f32 %v2824_v4, %v3520_v24  ;;  %v382_v14 = vmax.f32 %v340_v7, 1e-24 }
 0x117   : > { %v381_v2 = vmax.f32 %v338_v10, 1e-24  ;;  %501 = vst [vmem:[%s3626_s0 + $0x50] sm:$0xff] %v468_v6  ;;  %v437_v21 = vmul.f32 %v2826_v11, %v3523_v25 }
 0x118   : > { %v471_v15 = vmul.f32 %v3619_v35, %v438_v20  ;;  %2839 = vrsqrt.f32 %v382_v14 }
 0x119   : > { %v2828_v18 = vpop.eup %2827  ;;  %v470_v5 = vmul.f32 %v3619_v35, %v437_v21  ;;  %2841 = vrsqrt.f32 %v381_v2  ;;  %v344_v19 = vpop.xlane.xlu1 %343 }
 0x11a   : > { %v342_v22 = vpop.xlane.xlu0 %341  ;;  %v2830_v23 = vpop.eup %2829  ;;  %504 = vst [vmem:[%s3626_s0 + $0x68] sm:$0xff] %v471_v15  ;;  %v440_v24 = vmul.f32 %v2828_v18, %v3530_v28  ;;  %v384_v26 = vmax.f32 %v344_v19, 1e-24 }
 0x11b   : > { %v383_v27 = vmax.f32 %v342_v22, 1e-24  ;;  %503 = vst [vmem:[%s3626_s0 + $0x60] sm:$0xff] %v470_v5  ;;  %v439_v25 = vmul.f32 %v2830_v23, %v3533_v29 }
 0x11c   : > { %v473_v30 = vmul.f32 %v3619_v35, %v440_v24  ;;  %2843 = vrsqrt.f32 %v384_v26 }
 0x11d   : > { %v2832_v8 = vpop.eup %2831  ;;  %v472_v31 = vmul.f32 %v3619_v35, %v439_v25  ;;  %2845 = vrsqrt.f32 %v383_v27  ;;  %v348_v34 = vpop.xlane.xlu1 %347 }
 0x11e   : > { %v346_v9 = vpop.xlane.xlu0 %345  ;;  %v2834_v38 = vpop.eup %2833  ;;  %506 = vst [vmem:[%s3626_s0 + $0x78] sm:$0xff] %v473_v30  ;;  %v442_v28 = vmul.f32 %v2832_v8, %v3540_v32  ;;  %v386_v39 = vmax.f32 %v348_v34, 1e-24 }
 0x11f   : > { %v385_v42 = vmax.f32 %v346_v9, 1e-24  ;;  %505 = vst [vmem:[%s3626_s0 + $0x70] sm:$0xff] %v472_v31  ;;  %v441_v29 = vmul.f32 %v2834_v38, %v3543_v33 }
 0x120   : > { %v475_v43 = vmul.f32 %v3619_v35, %v442_v28  ;;  %2847 = vrsqrt.f32 %v386_v39 }
 0x121   : > { %v2836_v46 = vpop.eup %2835  ;;  %v474_v47 = vmul.f32 %v3619_v35, %v441_v29  ;;  %2849 = vrsqrt.f32 %v385_v42  ;;  %v352_v12 = vpop.xlane.xlu1 %351 }
 0x122   : > { %v350_v50 = vpop.xlane.xlu0 %349  ;;  %v2838_v51 = vpop.eup %2837  ;;  %508 = vst [vmem:[%s3626_s0 + $0x88] sm:$0xff] %v475_v43  ;;  %v444_v32 = vmul.f32 %v2836_v46, %v3550_v36  ;;  %v388_v13 = vmax.f32 %v352_v12, 1e-24 }
 0x123   : > { %v387_v54 = vmax.f32 %v350_v50, 1e-24  ;;  %507 = vst [vmem:[%s3626_s0 + $0x80] sm:$0xff] %v474_v47  ;;  %v443_v33 = vmul.f32 %v2838_v51, %v3553_v37 }
 0x124   : > { %v477_v55 = vmul.f32 %v3619_v35, %v444_v32  ;;  %2851 = vrsqrt.f32 %v388_v13 }
 0x125   : > { %v2840_v58 = vpop.eup %2839  ;;  %v476_v59 = vmul.f32 %v3619_v35, %v443_v33  ;;  %2853 = vrsqrt.f32 %v387_v54  ;;  %v356_v62 = vpop.xlane.xlu1 %355 }
 0x126   : > { %v354_v0 = vpop.xlane.xlu0 %353  ;;  %v2842_v16 = vpop.eup %2841  ;;  %510 = vst [vmem:[%s3626_s0 + $0x98] sm:$0xff] %v477_v55  ;;  %v446_v36 = vmul.f32 %v2840_v58, %v3560_v40  ;;  %v390_v63 = vmax.f32 %v356_v62, 1e-24 }
 0x127   : > { %v389_v1 = vmax.f32 %v354_v0, 1e-24  ;;  %509 = vst [vmem:[%s3626_s0 + $0x90] sm:$0xff] %v476_v59  ;;  %v445_v37 = vmul.f32 %v2842_v16, %v3563_v41 }
 0x128   : > { %v479_v17 = vmul.f32 %v3619_v35, %v446_v36  ;;  %2855 = vrsqrt.f32 %v390_v63 }
 0x129   : > { %v2844_v3 = vpop.eup %2843  ;;  %v478_v4 = vmul.f32 %v3619_v35, %v445_v37  ;;  %2857 = vrsqrt.f32 %v389_v1  ;;  %v360_v6 = vpop.xlane.xlu1 %359 }
 0x12a   : > { %v358_v7 = vpop.xlane.xlu0 %357  ;;  %v2846_v10 = vpop.eup %2845  ;;  %512 = vst [vmem:[%s3626_s0 + $0xa8] sm:$0xff] %v479_v17  ;;  %v448_v40 = vmul.f32 %v2844_v3, %v3570_v44  ;;  %v392_v11 = vmax.f32 %v360_v6, 1e-24 }
 0x12b   : > { %v391_v20 = vmax.f32 %v358_v7, 1e-24  ;;  %511 = vst [vmem:[%s3626_s0 + $0xa0] sm:$0xff] %v478_v4  ;;  %v447_v41 = vmul.f32 %v2846_v10, %v3573_v45 }
 0x12c   : > { %v481_v14 = vmul.f32 %v3619_v35, %v448_v40  ;;  %2859 = vrsqrt.f32 %v392_v11 }
 0x12d   : > { %v2848_v2 = vpop.eup %2847  ;;  %v480_v21 = vmul.f32 %v3619_v35, %v447_v41  ;;  %2861 = vrsqrt.f32 %v391_v20 }
 0x12e   : > { %v2850_v15 = vpop.eup %2849  ;;  %514 = vst [vmem:[%s3626_s0 + $0xb8] sm:$0xff] %v481_v14  ;;  %v450_v18 = vmul.f32 %v2848_v2, %v3580_v48 }
 0x12f   : > { %513 = vst [vmem:[%s3626_s0 + $0xb0] sm:$0xff] %v480_v21  ;;  %v449_v44 = vmul.f32 %v2850_v15, %v3583_v49 }
 0x130   : > { %v483_v5 = vmul.f32 %v3619_v35, %v450_v18 }
 0x131   : > { %v2852_v45 = vpop.eup %2851  ;;  %v482_v19 = vmul.f32 %v3619_v35, %v449_v44 }
 0x132   : > { %v2854_v22 = vpop.eup %2853  ;;  %516 = vst [vmem:[%s3626_s0 + $0xc8] sm:$0xff] %v483_v5  ;;  %v452_v23 = vmul.f32 %v2852_v45, %v3590_v52 }
 0x133   : > { %515 = vst [vmem:[%s3626_s0 + $0xc0] sm:$0xff] %v482_v19  ;;  %v451_v24 = vmul.f32 %v2854_v22, %v3593_v53 }
 0x134   : > { %v485_v48 = vmul.f32 %v3619_v35, %v452_v23 }
 0x135   : > { %v2856_v26 = vpop.eup %2855  ;;  %v484_v27 = vmul.f32 %v3619_v35, %v451_v24 }
 0x136   : > { %v2858_v49 = vpop.eup %2857  ;;  %518 = vst [vmem:[%s3626_s0 + $0xd8] sm:$0xff] %v485_v48  ;;  %v454_v25 = vmul.f32 %v2856_v26, %v3600_v56 }
 0x137   : > { %517 = vst [vmem:[%s3626_s0 + $0xd0] sm:$0xff] %v484_v27  ;;  %v453_v30 = vmul.f32 %v2858_v49, %v3603_v57 }
 0x138   : > { %v487_v52 = vmul.f32 %v3619_v35, %v454_v25 }
 0x139   : > { %v2860_v8 = vpop.eup %2859  ;;  %v486_v31 = vmul.f32 %v3619_v35, %v453_v30 }
 0x13a   : > { %v2862_v53 = vpop.eup %2861  ;;  %520 = vst [vmem:[%s3626_s0 + $0xe8] sm:$0xff] %v487_v52  ;;  %v456_v34 = vmul.f32 %v2860_v8, %v3610_v60 }
 0x13b   : > { %519 = vst [vmem:[%s3626_s0 + $0xe0] sm:$0xff] %v486_v31  ;;  %v455_v9 = vmul.f32 %v2862_v53, %v3613_v61 }
 0x13c   : > { %v489_v38 = vmul.f32 %v3619_v35, %v456_v34 }
 0x13d   : > { %v488_v28 = vmul.f32 %v3619_v35, %v455_v9 }
 0x13e   : > { %522 = vst [vmem:[%s3626_s0 + $0xf8] sm:$0xff] %v489_v38 }
 0x13f   : > { %521 = vst [vmem:[%s3626_s0 + $0xf0] sm:$0xff] %v488_v28 }
 0x140 PF: > { %s3721_s30 = sadd.s32 1, %s3242_s19  ;;  %s605_s8 = sshra.s32 %s3418_s26, 3 }
 0x141   : > { %p524_p9 = scmp.lt.s32.totalorder %s3721_s30, 0  ;;  %s525_s27 = ssub.s32 0, %s3721_s30 }
 0x142   : > { %s2196_s9 = smin.u32 %s525_s27, %s3721_s30  ;;  %s2346_s10 = sshll.u32 %s605_s8, 4 }
 0x143   : > { %s527_s11 = sand.u32 1, %s2196_s9   ;;  %s3727_s29 = scalar_lea.vmem [#allocation2], %s2346_s10 }
 0x144   : > { %s528_s25 = ssub.s32 0, %s527_s11  ;;  %v2897_v56 = vld [vmem:[%s3727_s29 + $0x4] ss:$16 sps:$4 sm:$0xff]   ;;  %v2900_v57 = vld [vmem:[%s3727_s29 + $0xc] ss:$16 sps:$4 sm:$0xff]   ;;  %p2299_p7 = scmp.ge.s32.totalorder %s3242_s19, 2 }
 0x145   : > { %s4359_s25 = smov (!%p524_p9, %s528_s25), %s527_s11  ;;  %1218 = vmatprep.mubr.bf16.mxu0 %v2897_v56  ;;  %1379 = vmatprep.mubr.bf16.mxu1 %v2900_v57  ;;  %v2895_v7 = vld [vmem:[%s3727_s29] ss:$16 sps:$4 sm:$0xff]   ;;  %v2898_v40 = vld [vmem:[%s3727_s29 + $0x8] ss:$16 sps:$4 sm:$0xff]   ;;  %v2901_v20 = vld [vmem:[%s3727_s29 + $0x24] ss:$16 sps:$4 sm:$0xff]  }
 0x146   : > { %p2198_p0 = scmp.lt.s32.totalorder %s4359_s25, 0  ;;  %s534_s13 = sadd.s32 2, %s4359_s25  ;;  %v2903_v41 = vld [vmem:[%s3727_s29 + $0x2c] ss:$16 sps:$4 sm:$0xff]   ;;  %v2905_v14 = vld [vmem:[%s3727_s29 + $0x20] ss:$16 sps:$4 sm:$0xff]  }
 0x147   : > { %v2906_v2 = vld [vmem:[%s3727_s29 + $0x28] ss:$16 sps:$4 sm:$0xff]   ;;  %v2907_v21 = vld [vmem:[%s3727_s29 + $0x44] ss:$16 sps:$4 sm:$0xff]   ;;  %v2909_v15 = vld [vmem:[%s3727_s29 + $0x4c] ss:$16 sps:$4 sm:$0xff]  }
 0x148   : > { %s4361_s13 = smov (!%p2198_p0, %s534_s13), %s4359_s25  ;;  %v2911_v18 = vld [vmem:[%s3727_s29 + $0x40] ss:$16 sps:$4 sm:$0xff]   ;;  %v2912_v44 = vld [vmem:[%s3727_s29 + $0x48] ss:$16 sps:$4 sm:$0xff]   ;;  %v2913_v5 = vld [vmem:[%s3727_s29 + $0x64] ss:$16 sps:$4 sm:$0xff]  }
 0x149   : > { %s2199_s12 = sshll.u32 %s4361_s13, 9  ;;  %v2915_v45 = vld [vmem:[%s3727_s29 + $0x6c] ss:$16 sps:$4 sm:$0xff]   ;;  %v2917_v19 = vld [vmem:[%s3727_s29 + $0x60] ss:$16 sps:$4 sm:$0xff]   ;;  %p1512_p13 = scmp.lt.s32.totalorder (!%p2299_p7), %s3242_s19, 0 }
 0x14a   : > { %s537_s5 = sshra.s32 %s2199_s12, 3  ;;  %v2918_v22 = vld [vmem:[%s3727_s29 + $0x68] ss:$16 sps:$4 sm:$0xff]   ;;  %v2919_v23 = vld [vmem:[%s3727_s29 + $0x84] ss:$16 sps:$4 sm:$0xff]   ;;  %s1513_s0 = ssub.s32 (!%p2299_p7), 0, %s3242_s19 }
 0x14b   : > { %s2200_s24 = sshll.u32 %s537_s5, 2  ;;  %v2921_v24 = vld [vmem:[%s3727_s29 + $0x8c] ss:$16 sps:$4 sm:$0xff]   ;;  %v2923_v48 = vld [vmem:[%s3727_s29 + $0x80] ss:$16 sps:$4 sm:$0xff]   ;;  %s2300_s8 = smin.u32 (!%p2299_p7), %s3242_s19, %s1513_s0 }
 0x14c   : > { %s3731_s7 = scalar_lea.vmem [#allocation3], %s2200_s24  ;;  %v2924_v26 = vld [vmem:[%s3727_s29 + $0x88] ss:$16 sps:$4 sm:$0xff]   ;;  %v2925_v27 = vld [vmem:[%s3727_s29 + $0xa4] ss:$16 sps:$4 sm:$0xff]   ;;  %s1515_s27 = sand.u32 (!%p2299_p7), 1, %s2300_s8  }
 0x14d   : > { %v2863_v60 = vld [vmem:[%s3731_s7 + $0x78] sm:$0xff]   ;;  %v2867_v42 = vld [vmem:[%s3731_s7 + $0x70] sm:$0xff]   ;;  %v2871_v47 = vld [vmem:[%s3731_s7 + $0x68] sm:$0xff]   ;;  %s1516_s9 = ssub.s32 (!%p2299_p7), 0, %s1515_s27 }
 0x14e   : > { %v2864_v61 = vld [vmem:[%s3731_s7 + $0xf8] sm:$0xff]   ;;  %2475 = vmatprep.subr.bf16.mxu0 %v2863_v60  ;;  %v2868_v29 = vld [vmem:[%s3731_s7 + $0xf0] sm:$0xff]   ;;  %v2872_v12 = vld [vmem:[%s3731_s7 + $0xe8] sm:$0xff]  }
 0x14f   : > { %v2865_v35 = vld [vmem:[%s3731_s7 + $0x38] sm:$0xff]   ;;  %2587 = vmatprep.subr.bf16.mxu1 %v2864_v61  ;;  %v2869_v43 = vld [vmem:[%s3731_s7 + $0x30] sm:$0xff]   ;;  %v2873_v50 = vld [vmem:[%s3731_s7 + $0x28] sm:$0xff]  }
 0x150   : > { %v2866_v39 = vld [vmem:[%s3731_s7 + $0xb8] sm:$0xff]   ;;  %2476 = vmatpush3.bf16.msra.mxu0 %v2865_v35  ;;  %v2870_v46 = vld [vmem:[%s3731_s7 + $0xb0] sm:$0xff]   ;;  %v2874_v51 = vld [vmem:[%s3731_s7 + $0xa8] sm:$0xff]  }
 0x151   : > { %2588 = vmatpush3.bf16.msra.mxu1 %v2866_v39  ;;  %2477 = vmatprep.subr.bf16.mxu0 %v2867_v42  ;;  %v2875_v32 = vld [vmem:[%s3731_s7 + $0x60] sm:$0xff]   ;;  %v2879_v55 = vld [vmem:[%s3731_s7 + $0x58] sm:$0xff]   ;;  %v2883_v0 = vld [vmem:[%s3731_s7 + $0x50] sm:$0xff]  }
 0x152   : > { %2589 = vmatprep.subr.bf16.mxu1 %v2868_v29  ;;  %v2876_v13 = vld [vmem:[%s3731_s7 + $0xe0] sm:$0xff]   ;;  %v2880_v58 = vld [vmem:[%s3731_s7 + $0xd8] sm:$0xff]   ;;  %v2884_v16 = vld [vmem:[%s3731_s7 + $0xd0] sm:$0xff]  }
 0x153   : > { %v2877_v54 = vld [vmem:[%s3731_s7 + $0x20] sm:$0xff]   ;;  %v2881_v59 = vld [vmem:[%s3731_s7 + $0x18] sm:$0xff]   ;;  %v2885_v36 = vld [vmem:[%s3731_s7 + $0x10] sm:$0xff]  }
 0x154   : > { %2478 = vmatpush3.bf16.msra.mxu0 %v2869_v43  ;;  %v2878_v33 = vld [vmem:[%s3731_s7 + $0xa0] sm:$0xff]   ;;  %v2882_v62 = vld [vmem:[%s3731_s7 + $0x98] sm:$0xff]   ;;  %v2886_v63 = vld [vmem:[%s3731_s7 + $0x90] sm:$0xff]  }
 0x155   : > { %2590 = vmatpush3.bf16.msra.mxu1 %v2870_v46  ;;  %2479 = vmatprep.subr.bf16.mxu0 %v2871_v47  ;;  %v2887_v1 = vld [vmem:[%s3731_s7 + $0x48] sm:$0xff]   ;;  %v2891_v4 = vld [vmem:[%s3731_s7 + $0x40] sm:$0xff]  }
 0x156   : > { %2591 = vmatprep.subr.bf16.mxu1 %v2872_v12  ;;  %v2888_v37 = vld [vmem:[%s3731_s7 + $0xc8] sm:$0xff]   ;;  %v2892_v6 = vld [vmem:[%s3731_s7 + $0xc0] sm:$0xff]  }
 0x157   : > { %v2889_v17 = vld [vmem:[%s3731_s7 + $0x8] sm:$0xff]   ;;  %v2893_v10 = vld [vmem:[%s3731_s7] sm:$0xff]  }
 0x158   : > { %2480 = vmatpush3.bf16.msra.mxu0 %v2873_v50  ;;  %v2890_v3 = vld [vmem:[%s3731_s7 + $0x88] sm:$0xff]   ;;  %v2894_v11 = vld [vmem:[%s3731_s7 + $0x80] sm:$0xff]  }
 0x159   : > { %2592 = vmatpush3.bf16.msra.mxu1 %v2874_v51  ;;  %2481 = vmatprep.subr.bf16.mxu0 %v2875_v32  ;;  %v2927_v49 = vld [vmem:[%s3727_s29 + $0xac] ss:$16 sps:$4 sm:$0xff]   ;;  %v2929_v25 = vld [vmem:[%s3727_s29 + $0xa0] ss:$16 sps:$4 sm:$0xff]   ;;  %v2930_v30 = vld [vmem:[%s3727_s29 + $0xa8] ss:$16 sps:$4 sm:$0xff]  }
 0x15a   : > { %2593 = vmatprep.subr.bf16.mxu1 %v2876_v13  ;;  %v2931_v52 = vld [vmem:[%s3727_s29 + $0xc4] ss:$16 sps:$4 sm:$0xff]   ;;  %v2933_v8 = vld [vmem:[%s3727_s29 + $0xcc] ss:$16 sps:$4 sm:$0xff]   ;;  %v2935_v31 = vld [vmem:[%s3727_s29 + $0xc0] ss:$16 sps:$4 sm:$0xff]  }
 0x15b   : > { %v2936_v53 = vld [vmem:[%s3727_s29 + $0xc8] ss:$16 sps:$4 sm:$0xff]   ;;  %v2937_v34 = vld [vmem:[%s3727_s29 + $0xe4] ss:$16 sps:$4 sm:$0xff]   ;;  %v2939_v9 = vld [vmem:[%s3727_s29 + $0xec] ss:$16 sps:$4 sm:$0xff]  }
 0x15c   : > { %2482 = vmatpush3.bf16.msra.mxu0 %v2877_v54  ;;  %v2941_v38 = vld [vmem:[%s3727_s29 + $0xe0] ss:$16 sps:$4 sm:$0xff]   ;;  %v2942_v28 = vld [vmem:[%s3727_s29 + $0xe8] ss:$16 sps:$4 sm:$0xff]   ;;  %v2943_v56 = vld [vmem:[%s3727_s29 + $0x104] ss:$16 sps:$4 sm:$0xff]  }
 0x15d   : > { %2594 = vmatpush3.bf16.msra.mxu1 %v2878_v33  ;;  %2483 = vmatprep.subr.bf16.mxu0 %v2879_v55  ;;  %v2945_v57 = vld [vmem:[%s3727_s29 + $0x10c] ss:$16 sps:$4 sm:$0xff]   ;;  %v2947_v60 = vld [vmem:[%s3727_s29 + $0x100] ss:$16 sps:$4 sm:$0xff]   ;;  %v2948_v61 = vld [vmem:[%s3727_s29 + $0x108] ss:$16 sps:$4 sm:$0xff]  }
 0x15e   : > { %2595 = vmatprep.subr.bf16.mxu1 %v2880_v58  ;;  %v2949_v35 = vld [vmem:[%s3727_s29 + $0x124] ss:$16 sps:$4 sm:$0xff]   ;;  %v2951_v39 = vld [vmem:[%s3727_s29 + $0x12c] ss:$16 sps:$4 sm:$0xff]   ;;  %v2953_v42 = vld [vmem:[%s3727_s29 + $0x120] ss:$16 sps:$4 sm:$0xff]  }
 0x15f   : > { %v2954_v29 = vld [vmem:[%s3727_s29 + $0x128] ss:$16 sps:$4 sm:$0xff]   ;;  %v2955_v43 = vld [vmem:[%s3727_s29 + $0x144] ss:$16 sps:$4 sm:$0xff]   ;;  %v2957_v46 = vld [vmem:[%s3727_s29 + $0x14c] ss:$16 sps:$4 sm:$0xff]  }
 0x160   : > { %2484 = vmatpush3.bf16.msra.mxu0 %v2881_v59  ;;  %v2959_v47 = vld [vmem:[%s3727_s29 + $0x140] ss:$16 sps:$4 sm:$0xff]   ;;  %v2960_v12 = vld [vmem:[%s3727_s29 + $0x148] ss:$16 sps:$4 sm:$0xff]   ;;  %v2961_v50 = vld [vmem:[%s3727_s29 + $0x164] ss:$16 sps:$4 sm:$0xff]  }
 0x161   : > { %2596 = vmatpush3.bf16.msra.mxu1 %v2882_v62  ;;  %2485 = vmatprep.subr.bf16.mxu0 %v2883_v0  ;;  %v2963_v51 = vld [vmem:[%s3727_s29 + $0x16c] ss:$16 sps:$4 sm:$0xff]   ;;  %v2965_v32 = vld [vmem:[%s3727_s29 + $0x160] ss:$16 sps:$4 sm:$0xff]   ;;  %v2966_v13 = vld [vmem:[%s3727_s29 + $0x168] ss:$16 sps:$4 sm:$0xff]  }
 0x162   : > { %2597 = vmatprep.subr.bf16.mxu1 %v2884_v16  ;;  %v2967_v54 = vld [vmem:[%s3727_s29 + $0x184] ss:$16 sps:$4 sm:$0xff]   ;;  %v2969_v33 = vld [vmem:[%s3727_s29 + $0x18c] ss:$16 sps:$4 sm:$0xff]   ;;  %v2971_v55 = vld [vmem:[%s3727_s29 + $0x180] ss:$16 sps:$4 sm:$0xff]  }
 0x163   : > { %v2972_v58 = vld [vmem:[%s3727_s29 + $0x188] ss:$16 sps:$4 sm:$0xff]   ;;  %v2973_v59 = vld [vmem:[%s3727_s29 + $0x1a4] ss:$16 sps:$4 sm:$0xff]   ;;  %v2975_v62 = vld [vmem:[%s3727_s29 + $0x1ac] ss:$16 sps:$4 sm:$0xff]  }
 0x164   : > { %2486 = vmatpush3.bf16.msra.mxu0 %v2885_v36  ;;  %v2977_v0 = vld [vmem:[%s3727_s29 + $0x1a0] ss:$16 sps:$4 sm:$0xff]   ;;  %v2978_v16 = vld [vmem:[%s3727_s29 + $0x1a8] ss:$16 sps:$4 sm:$0xff]   ;;  %v2979_v36 = vld [vmem:[%s3727_s29 + $0x1c4] ss:$16 sps:$4 sm:$0xff]  }
 0x165   : > { %2598 = vmatpush3.bf16.msra.mxu1 %v2886_v63  ;;  %2487 = vmatprep.subr.bf16.mxu0 %v2887_v1  ;;  %v2981_v63 = vld [vmem:[%s3727_s29 + $0x1cc] ss:$16 sps:$4 sm:$0xff]   ;;  %v2983_v1 = vld [vmem:[%s3727_s29 + $0x1c0] ss:$16 sps:$4 sm:$0xff]  }
 0x166   : > { %2599 = vmatprep.subr.bf16.mxu1 %v2888_v37  ;;  %v2984_v37 = vld [vmem:[%s3727_s29 + $0x1c8] ss:$16 sps:$4 sm:$0xff]  }
 0x168   : > { %2488 = vmatpush3.bf16.msra.mxu0 %v2889_v17  ;;  %v2985_v17 = vld [vmem:[%s3727_s29 + $0x1e4] ss:$16 sps:$4 sm:$0xff]  }
 0x169   : > { %2600 = vmatpush3.bf16.msra.mxu1 %v2890_v3  ;;  %2489 = vmatprep.subr.bf16.mxu0 %v2891_v4  ;;  %v2987_v3 = vld [vmem:[%s3727_s29 + $0x1ec] ss:$16 sps:$4 sm:$0xff]   ;;  %v2989_v4 = vld [vmem:[%s3727_s29 + $0x1e0] ss:$16 sps:$4 sm:$0xff]  }
 0x16a   : > { %2601 = vmatprep.subr.bf16.mxu1 %v2892_v6  ;;  %v2990_v6 = vld [vmem:[%s3727_s29 + $0x1e8] ss:$16 sps:$4 sm:$0xff]  }
 0x16c   : > { %2490 = vmatpush3.bf16.msra.mxu0 %v2893_v10 }
 0x16d   : > { %2602 = vmatpush3.bf16.msra.mxu1 %v2894_v11 }
 0x16f   : > { %1219 = vmatmul.mubr.bf16.vlgmr.msra.gmra.mxu0 %v2895_v7 }
 0x170   : > { %1380 = vmatmul.mubr.bf16.vlgmr.msra.gmra.mxu1 %v2898_v40  ;;  %1226 = vmatprep.mubr.bf16.mxu0 %v2901_v20 }
 0x171   : > { %1387 = vmatprep.mubr.bf16.mxu1 %v2903_v41 }
 0x177   : > { %1227 = vmatmul.mubr.bf16.gmra.mxu0 %v2905_v14 }
 0x178   : > { %1388 = vmatmul.mubr.bf16.gmra.mxu1 %v2906_v2  ;;  %1234 = vmatprep.mubr.bf16.mxu0 %v2907_v21 }
 0x179   : > { %1395 = vmatprep.mubr.bf16.mxu1 %v2909_v15 }
 0x17f   : > { %1235 = vmatmul.mubr.bf16.gmra.mxu0 %v2911_v18 }
 0x180   : > { %1396 = vmatmul.mubr.bf16.gmra.mxu1 %v2912_v44  ;;  %1242 = vmatprep.mubr.bf16.mxu0 %v2913_v5 }
 0x181   : > { %1403 = vmatprep.mubr.bf16.mxu1 %v2915_v45 }
 0x187   : > { %1243 = vmatmul.mubr.bf16.gmra.mxu0 %v2917_v19 }
 0x188   : > { %1404 = vmatmul.mubr.bf16.gmra.mxu1 %v2918_v22  ;;  %1250 = vmatprep.mubr.bf16.mxu0 %v2919_v23 }
 0x189   : > { %1411 = vmatprep.mubr.bf16.mxu1 %v2921_v24 }
 0x18f   : > { %1251 = vmatmul.mubr.bf16.gmra.mxu0 %v2923_v48 }
 0x190   : > { %1412 = vmatmul.mubr.bf16.gmra.mxu1 %v2924_v26  ;;  %1258 = vmatprep.mubr.bf16.mxu0 %v2925_v27 }
 0x191   : > { %1419 = vmatprep.mubr.bf16.mxu1 %v2927_v49 }
 0x197   : > { %1259 = vmatmul.mubr.bf16.gmra.mxu0 %v2929_v25 }
 0x198   : > { %1420 = vmatmul.mubr.bf16.gmra.mxu1 %v2930_v30  ;;  %1266 = vmatprep.mubr.bf16.mxu0 %v2931_v52 }
 0x199   : > { %1427 = vmatprep.mubr.bf16.mxu1 %v2933_v8 }
 0x19f   : > { %1267 = vmatmul.mubr.bf16.gmra.mxu0 %v2935_v31 }
 0x1a0   : > { %1428 = vmatmul.mubr.bf16.gmra.mxu1 %v2936_v53  ;;  %1274 = vmatprep.mubr.bf16.mxu0 %v2937_v34 }
 0x1a1   : > { %1435 = vmatprep.mubr.bf16.mxu1 %v2939_v9 }
 0x1a7   : > { %1275 = vmatmul.mubr.bf16.gmra.mxu0 %v2941_v38 }
 0x1a8   : > { %1436 = vmatmul.mubr.bf16.gmra.mxu1 %v2942_v28  ;;  %1282 = vmatprep.mubr.bf16.mxu0 %v2943_v56 }
 0x1a9   : > { %1443 = vmatprep.mubr.bf16.mxu1 %v2945_v57 }
 0x1af   : > { %1283 = vmatmul.mubr.bf16.gmra.mxu0 %v2947_v60 }
 0x1b0   : > { %1444 = vmatmul.mubr.bf16.gmra.mxu1 %v2948_v61  ;;  %1290 = vmatprep.mubr.bf16.mxu0 %v2949_v35 }
 0x1b1   : > { %1451 = vmatprep.mubr.bf16.mxu1 %v2951_v39 }
 0x1b7   : > { %1291 = vmatmul.mubr.bf16.gmra.mxu0 %v2953_v42 }
 0x1b8   : > { %1452 = vmatmul.mubr.bf16.gmra.mxu1 %v2954_v29  ;;  %1298 = vmatprep.mubr.bf16.mxu0 %v2955_v43 }
 0x1b9   : > { %1459 = vmatprep.mubr.bf16.mxu1 %v2957_v46 }
 0x1bf   : > { %1299 = vmatmul.mubr.bf16.gmra.mxu0 %v2959_v47 }
 0x1c0   : > { %1460 = vmatmul.mubr.bf16.gmra.mxu1 %v2960_v12  ;;  %1306 = vmatprep.mubr.bf16.mxu0 %v2961_v50 }
 0x1c1   : > { %1467 = vmatprep.mubr.bf16.mxu1 %v2963_v51 }
 0x1c7   : > { %1307 = vmatmul.mubr.bf16.gmra.mxu0 %v2965_v32 }
 0x1c8   : > { %1468 = vmatmul.mubr.bf16.gmra.mxu1 %v2966_v13  ;;  %1314 = vmatprep.mubr.bf16.mxu0 %v2967_v54 }
 0x1c9   : > { %1475 = vmatprep.mubr.bf16.mxu1 %v2969_v33 }
 0x1cf   : > { %1315 = vmatmul.mubr.bf16.gmra.mxu0 %v2971_v55 }
 0x1d0   : > { %1476 = vmatmul.mubr.bf16.gmra.mxu1 %v2972_v58  ;;  %1322 = vmatprep.mubr.bf16.mxu0 %v2973_v59 }
 0x1d1   : > { %1483 = vmatprep.mubr.bf16.mxu1 %v2975_v62 }
 0x1d7   : > { %1323 = vmatmul.mubr.bf16.gmra.mxu0 %v2977_v0 }
 0x1d8   : > { %1484 = vmatmul.mubr.bf16.gmra.mxu1 %v2978_v16  ;;  %1330 = vmatprep.mubr.bf16.mxu0 %v2979_v36 }
 0x1d9   : > { %1491 = vmatprep.mubr.bf16.mxu1 %v2981_v63 }
 0x1df   : > { %1331 = vmatmul.mubr.bf16.gmra.mxu0 %v2983_v1 }
 0x1e0   : > { %1492 = vmatmul.mubr.bf16.gmra.mxu1 %v2984_v37  ;;  %1338 = vmatprep.mubr.bf16.mxu0 %v2985_v17 }
 0x1e1   : > { %1499 = vmatprep.mubr.bf16.mxu1 %v2987_v3 }
 0x1e7   : > { %1339 = vmatmul.mubr.bf16.gmra.mxu0 %v2989_v4 }
 0x1e8   : > { %1500 = vmatmul.mubr.bf16.gmra.mxu1 %v2990_v6 }
 0x22f   : > { %v2491_v7 = vpop.f32.mrf.mxu0 }
 0x230   : > { %v2603_v10 = vpop.f32.mrf.mxu1 }
 0x231   : > { %v2492_v40 = vpop.f32.mrf.mxu0 }
 0x232   : > { %v2493_v11 = vadd.f32 %v2492_v40, %v2491_v7  ;;  %v2604_v20 = vpop.f32.mrf.mxu1 }
 0x233   : > { %v2605_v41 = vadd.f32 %v2604_v20, %v2603_v10  ;;  %v2494_v14 = vpop.f32.mrf.mxu0 }
 0x234   : > { %v2606_v2 = vpop.f32.mrf.mxu1 }
 0x235   : > { %v3827_v21 = vadd.f32 %v2605_v41, %v2493_v11  ;;  %v2495_v15 = vpop.f32.mrf.mxu0 }
 0x236   : > { %v2496_v18 = vadd.f32 %v2495_v15, %v2494_v14  ;;  %v2607_v44 = vpop.f32.mrf.mxu1 }
 0x237   : > { %v2608_v5 = vadd.f32 %v2607_v44, %v2606_v2  ;;  %v2497_v45 = vpop.f32.mrf.mxu0 }
 0x238   : > { %v2609_v19 = vpop.f32.mrf.mxu1 }
 0x239   : > { %v3829_v22 = vadd.f32 %v2608_v5, %v2496_v18  ;;  %v2498_v23 = vpop.f32.mrf.mxu0 }
 0x23a   : > { %v2499_v24 = vadd.f32 %v2498_v23, %v2497_v45  ;;  %v2610_v48 = vpop.f32.mrf.mxu1 }
 0x23b   : > { %v2611_v26 = vadd.f32 %v2610_v48, %v2609_v19  ;;  %v2500_v27 = vpop.f32.mrf.mxu0 }
 0x23c   : > { %v2612_v49 = vpop.f32.mrf.mxu1 }
 0x23d   : > { %v3831_v25 = vadd.f32 %v2611_v26, %v2499_v24  ;;  %v2501_v30 = vpop.f32.mrf.mxu0 }
 0x23e   : > { %v2502_v52 = vadd.f32 %v2501_v30, %v2500_v27  ;;  %v2613_v8 = vpop.f32.mrf.mxu1 }
 0x23f   : > { %v2614_v31 = vadd.f32 %v2613_v8, %v2612_v49  ;;  %v2503_v53 = vpop.f32.mrf.mxu0 }
 0x240   : > { %v2615_v34 = vpop.f32.mrf.mxu1 }
 0x241   : > { %v3833_v9 = vadd.f32 %v2614_v31, %v2502_v52  ;;  %v2504_v38 = vpop.f32.mrf.mxu0 }
 0x242   : > { %v2505_v28 = vadd.f32 %v2504_v38, %v2503_v53  ;;  %v2616_v56 = vpop.f32.mrf.mxu1 }
 0x243   : > { %v2617_v57 = vadd.f32 %v2616_v56, %v2615_v34  ;;  %v2506_v60 = vpop.f32.mrf.mxu0 }
 0x244   : > { %v2618_v61 = vpop.f32.mrf.mxu1 }
 0x245   : > { %v3835_v35 = vadd.f32 %v2617_v57, %v2505_v28  ;;  %v2507_v39 = vpop.f32.mrf.mxu0 }
 0x246   : > { %v2508_v42 = vadd.f32 %v2507_v39, %v2506_v60  ;;  %v2619_v29 = vpop.f32.mrf.mxu1 }
 0x247   : > { %v2620_v43 = vadd.f32 %v2619_v29, %v2618_v61  ;;  %v2509_v46 = vpop.f32.mrf.mxu0 }
 0x248   : > { %v2621_v47 = vpop.f32.mrf.mxu1 }
 0x249   : > { %v3837_v12 = vadd.f32 %v2620_v43, %v2508_v42  ;;  %v2510_v50 = vpop.f32.mrf.mxu0 }
 0x24a   : > { %v2511_v51 = vadd.f32 %v2510_v50, %v2509_v46  ;;  %v2622_v32 = vpop.f32.mrf.mxu1 }
 0x24b   : > { %v2623_v13 = vadd.f32 %v2622_v32, %v2621_v47  ;;  %v2512_v54 = vpop.f32.mrf.mxu0 }
 0x24c   : > { %v2624_v33 = vpop.f32.mrf.mxu1 }
 0x24d   : > { %v3839_v55 = vadd.f32 %v2623_v13, %v2511_v51  ;;  %v2513_v58 = vpop.f32.mrf.mxu0 }
 0x24e   : > { %v2514_v59 = vadd.f32 %v2513_v58, %v2512_v54  ;;  %v2625_v62 = vpop.f32.mrf.mxu1 }
 0x24f   : > { %v2626_v0 = vadd.f32 %v2625_v62, %v2624_v33  ;;  %v2515_v16 = vpop.f32.mrf.mxu0 }
 0x250   : > { %v2627_v36 = vpop.f32.mrf.mxu1 }
 0x251   : > { %v3841_v63 = vadd.f32 %v2626_v0, %v2514_v59  ;;  %v2516_v1 = vpop.f32.mrf.mxu0 }
 0x252   : > { %v2517_v37 = vadd.f32 %v2516_v1, %v2515_v16  ;;  %v2628_v17 = vpop.f32.mrf.mxu1 }
 0x253   : > { %v2629_v3 = vadd.f32 %v2628_v17, %v2627_v36  ;;  %v2518_v4 = vpop.f32.mrf.mxu0 }
 0x254   : > { %v2630_v6 = vpop.f32.mrf.mxu1 }
 0x255   : > { %v3843_v7 = vadd.f32 %v2629_v3, %v2517_v37  ;;  %v2519_v10 = vpop.f32.mrf.mxu0 }
 0x256   : > { %v2520_v40 = vadd.f32 %v2519_v10, %v2518_v4  ;;  %v2631_v11 = vpop.f32.mrf.mxu1 }
 0x257   : > { %v2632_v20 = vadd.f32 %v2631_v11, %v2630_v6  ;;  %v2521_v41 = vpop.f32.mrf.mxu0 }
 0x258   : > { %v2633_v14 = vpop.f32.mrf.mxu1 }
 0x259   : > { %v3845_v2 = vadd.f32 %v2632_v20, %v2520_v40  ;;  %v2522_v15 = vpop.f32.mrf.mxu0 }
 0x25a   : > { %v2523_v18 = vadd.f32 %v2522_v15, %v2521_v41  ;;  %v2634_v44 = vpop.f32.mrf.mxu1 }
 0x25b   : > { %v2635_v5 = vadd.f32 %v2634_v44, %v2633_v14  ;;  %v2524_v45 = vpop.f32.mrf.mxu0 }
 0x25c   : > { %v2636_v19 = vpop.f32.mrf.mxu1 }
 0x25d   : > { %v3847_v23 = vadd.f32 %v2635_v5, %v2523_v18  ;;  %v2525_v24 = vpop.f32.mrf.mxu0 }
 0x25e   : > { %v2526_v48 = vadd.f32 %v2525_v24, %v2524_v45  ;;  %v2637_v26 = vpop.f32.mrf.mxu1 }
 0x25f   : > { %v2638_v27 = vadd.f32 %v2637_v26, %v2636_v19  ;;  %v2527_v49 = vpop.f32.mrf.mxu0 }
 0x260   : > { %v2639_v30 = vpop.f32.mrf.mxu1 }
 0x261   : > { %v3849_v52 = vadd.f32 %v2638_v27, %v2526_v48  ;;  %v2528_v8 = vpop.f32.mrf.mxu0 }
 0x262   : > { %v2529_v31 = vadd.f32 %v2528_v8, %v2527_v49  ;;  %v2640_v53 = vpop.f32.mrf.mxu1 }
 0x263   : > { %v2641_v34 = vadd.f32 %v2640_v53, %v2639_v30  ;;  %v2530_v38 = vpop.f32.mrf.mxu0 }
 0x264   : > { %v2642_v28 = vpop.f32.mrf.mxu1 }
 0x265   : > { %v3851_v56 = vadd.f32 %v2641_v34, %v2529_v31  ;;  %v2531_v57 = vpop.f32.mrf.mxu0 }
 0x266   : > { %v2532_v60 = vadd.f32 %v2531_v57, %v2530_v38  ;;  %v2643_v61 = vpop.f32.mrf.mxu1 }
 0x267   : > { %v2644_v39 = vadd.f32 %v2643_v61, %v2642_v28  ;;  %v2533_v42 = vpop.f32.mrf.mxu0 }
 0x268   : > { %v2645_v29 = vpop.f32.mrf.mxu1 }
 0x269   : > { %v3853_v43 = vadd.f32 %v2644_v39, %v2532_v60  ;;  %v2534_v46 = vpop.f32.mrf.mxu0 }
 0x26a   : > { %v2535_v47 = vadd.f32 %v2534_v46, %v2533_v42  ;;  %v2646_v50 = vpop.f32.mrf.mxu1 }
 0x26b   : > { %v2647_v51 = vadd.f32 %v2646_v50, %v2645_v29  ;;  %v2536_v32 = vpop.f32.mrf.mxu0 }
 0x26c   : > { %v2648_v13 = vpop.f32.mrf.mxu1 }
 0x26d   : > { %v3855_v54 = vadd.f32 %v2647_v51, %v2535_v47  ;;  %v2537_v33 = vpop.f32.mrf.mxu0 }
 0x26e   : > { %v2538_v58 = vadd.f32 %v2537_v33, %v2536_v32  ;;  %v2649_v59 = vpop.f32.mrf.mxu1 }
 0x26f   : > { %v2650_v62 = vadd.f32 %v2649_v59, %v2648_v13  ;;  %v2539_v0 = vpop.f32.mrf.mxu0 }
 0x270   : > { %v2651_v16 = vpop.f32.mrf.mxu1 }
 0x271   : > { %v3857_v36 = vadd.f32 %v2650_v62, %v2538_v58  ;;  %v2540_v1 = vpop.f32.mrf.mxu0 }
 0x272   : > { %v2541_v37 = vadd.f32 %v2540_v1, %v2539_v0  ;;  %v2652_v17 = vpop.f32.mrf.mxu1 }
 0x273   : > { %v2653_v3 = vadd.f32 %v2652_v17, %v2651_v16  ;;  %v2542_v4 = vpop.f32.mrf.mxu0 }
 0x274   : > { %v2654_v6 = vpop.f32.mrf.mxu1 }
 0x275   : > { %v3859_v10 = vadd.f32 %v2653_v3, %v2541_v37  ;;  %v2543_v40 = vpop.f32.mrf.mxu0 }
 0x276   : > { %v2544_v11 = vadd.f32 %v2543_v40, %v2542_v4  ;;  %v2655_v20 = vpop.f32.mrf.mxu1 }
 0x277   : > { %v2656_v41 = vadd.f32 %v2655_v20, %v2654_v6  ;;  %v2545_v14 = vpop.f32.mrf.mxu0 }
 0x278   : > { %v2657_v15 = vpop.f32.mrf.mxu1 }
 0x279   : > { %v3861_v18 = vadd.f32 %v2656_v41, %v2544_v11  ;;  %v2546_v44 = vpop.f32.mrf.mxu0 }
 0x27a   : > { %v2547_v5 = vadd.f32 %v2546_v44, %v2545_v14  ;;  %v2658_v45 = vpop.f32.mrf.mxu1 }
 0x27b   : > { %v2659_v19 = vadd.f32 %v2658_v45, %v2657_v15  ;;  %v2548_v24 = vpop.f32.mrf.mxu0 }
 0x27c   : > { %v2660_v48 = vpop.f32.mrf.mxu1 }
 0x27d   : > { %v3863_v26 = vadd.f32 %v2659_v19, %v2547_v5  ;;  %v2549_v27 = vpop.f32.mrf.mxu0 }
 0x27e   : > { %v2550_v49 = vadd.f32 %v2549_v27, %v2548_v24  ;;  %v2661_v30 = vpop.f32.mrf.mxu1 }
 0x27f   : > { %v2662_v8 = vadd.f32 %v2661_v30, %v2660_v48  ;;  %v2551_v31 = vpop.f32.mrf.mxu0 }
 0x280   : > { %v2663_v53 = vpop.f32.mrf.mxu1 }
 0x281   : > { %v3865_v34 = vadd.f32 %v2662_v8, %v2550_v49  ;;  %v2552_v38 = vpop.f32.mrf.mxu0 }
 0x282   : > { %v2553_v28 = vadd.f32 %v2552_v38, %v2551_v31  ;;  %v2664_v57 = vpop.f32.mrf.mxu1 }
 0x283   : > { %v2665_v60 = vadd.f32 %v2664_v57, %v2663_v53  ;;  %v2554_v61 = vpop.f32.mrf.mxu0 }
 0x284   : > { %v2666_v39 = vpop.f32.mrf.mxu1 }
 0x285   : > { %v3867_v42 = vadd.f32 %v2665_v60, %v2553_v28  ;;  %v2555_v29 = vpop.f32.mrf.mxu0 }
 0x286   : > { %v2556_v46 = vadd.f32 %v2555_v29, %v2554_v61  ;;  %v2667_v47 = vpop.f32.mrf.mxu1 }
 0x287   : > { %v2668_v50 = vadd.f32 %v2667_v47, %v2666_v39  ;;  %v2557_v51 = vpop.f32.mrf.mxu0 }
 0x288   : > { %v2669_v32 = vpop.f32.mrf.mxu1 }
 0x289   : > { %v3869_v13 = vadd.f32 %v2668_v50, %v2556_v46  ;;  %v2558_v33 = vpop.f32.mrf.mxu0 }
 0x28a   : > { %v2559_v58 = vadd.f32 %v2558_v33, %v2557_v51  ;;  %v2670_v59 = vpop.f32.mrf.mxu1 }
 0x28b   : > { %v2671_v62 = vadd.f32 %v2670_v59, %v2669_v32  ;;  %v2560_v0 = vpop.f32.mrf.mxu0 }
 0x28c   : > { %v2672_v16 = vpop.f32.mrf.mxu1 }
 0x28d   : > { %v3871_v1 = vadd.f32 %v2671_v62, %v2559_v58  ;;  %v2561_v37 = vpop.f32.mrf.mxu0 }
 0x28e   : > { %v2562_v17 = vadd.f32 %v2561_v37, %v2560_v0  ;;  %v2673_v3 = vpop.f32.mrf.mxu1 }
 0x28f   : > { %v2674_v4 = vadd.f32 %v2673_v3, %v2672_v16  ;;  %v2563_v6 = vpop.f32.mrf.mxu0 }
 0x290   : > { %v2675_v40 = vpop.f32.mrf.mxu1 }
 0x291   : > { %v3873_v11 = vadd.f32 %v2674_v4, %v2562_v17  ;;  %v2564_v20 = vpop.f32.mrf.mxu0 }
 0x292   : > { %v2565_v41 = vadd.f32 %v2564_v20, %v2563_v6  ;;  %v2676_v14 = vpop.f32.mrf.mxu1 }
 0x293   : > { %v2677_v15 = vadd.f32 %v2676_v14, %v2675_v40  ;;  %v2566_v44 = vpop.f32.mrf.mxu0 }
 0x294   : > { %v2678_v5 = vpop.f32.mrf.mxu1 }
 0x295   : > { %v3875_v45 = vadd.f32 %v2677_v15, %v2565_v41  ;;  %v2567_v19 = vpop.f32.mrf.mxu0 }
 0x296   : > { %v2568_v24 = vadd.f32 %v2567_v19, %v2566_v44  ;;  %v2679_v48 = vpop.f32.mrf.mxu1 }
 0x297   : > { %v2680_v27 = vadd.f32 %v2679_v48, %v2678_v5  ;;  %v2569_v49 = vpop.f32.mrf.mxu0 }
 0x298   : > { %v2681_v30 = vpop.f32.mrf.mxu1 }
 0x299   : > { %v3877_v8 = vadd.f32 %v2680_v27, %v2568_v24  ;;  %v2570_v31 = vpop.f32.mrf.mxu0 }
 0x29a   : > { %v2571_v53 = vadd.f32 %v2570_v31, %v2569_v49  ;;  %v2682_v38 = vpop.f32.mrf.mxu1 }
 0x29b   : > { %v2683_v28 = vadd.f32 %v2682_v38, %v2681_v30  ;;  %v2572_v57 = vpop.f32.mrf.mxu0 }
 0x29c   : > { %v2684_v60 = vpop.f32.mrf.mxu1 }
 0x29d   : > { %v3879_v61 = vadd.f32 %v2683_v28, %v2571_v53  ;;  %v2573_v39 = vpop.f32.mrf.mxu0 }
 0x29e   : > { %v2574_v29 = vadd.f32 %v2573_v39, %v2572_v57  ;;  %v2685_v46 = vpop.f32.mrf.mxu1 }
 0x29f   : > { %v2686_v47 = vadd.f32 %v2685_v46, %v2684_v60  ;;  %v2575_v50 = vpop.f32.mrf.mxu0 }
 0x2a0   : > { %v2687_v51 = vpop.f32.mrf.mxu1 }
 0x2a1   : > { %v3881_v32 = vadd.f32 %v2686_v47, %v2574_v29  ;;  %v2576_v33 = vpop.f32.mrf.mxu0 }
 0x2a2   : > { %v2577_v58 = vadd.f32 %v2576_v33, %v2575_v50  ;;  %v2688_v59 = vpop.f32.mrf.mxu1 }
 0x2a3   : > { %v2689_v62 = vadd.f32 %v2688_v59, %v2687_v51  ;;  %v2578_v0 = vpop.f32.mrf.mxu0 }
 0x2a4   : > { %v2690_v16 = vpop.f32.mrf.mxu1 }
 0x2a5   : > { %v3883_v37 = vadd.f32 %v2689_v62, %v2577_v58  ;;  %v2579_v17 = vpop.f32.mrf.mxu0 }
 0x2a6   : > { %v2580_v3 = vadd.f32 %v2579_v17, %v2578_v0  ;;  %v2691_v4 = vpop.f32.mrf.mxu1 }
 0x2a7   : > { %v2692_v6 = vadd.f32 %v2691_v4, %v2690_v16  ;;  %v2581_v40 = vpop.f32.mrf.mxu0 }
 0x2a8   : > { %v2693_v20 = vpop.f32.mrf.mxu1 }
 0x2a9   : > { %v3885_v41 = vadd.f32 %v2692_v6, %v2580_v3  ;;  %v2582_v14 = vpop.f32.mrf.mxu0 }
 0x2aa   : > { %v2583_v15 = vadd.f32 %v2582_v14, %v2581_v40  ;;  %v2694_v44 = vpop.f32.mrf.mxu1 }
 0x2ab   : > { %v2695_v5 = vadd.f32 %v2694_v44, %v2693_v20  ;;  %v2584_v19 = vpop.f32.mrf.mxu0 }
 0x2ac   : > { %v2696_v24 = vpop.f32.mrf.mxu1 }
 0x2ad   : > { %v3887_v48 = vadd.f32 %v2695_v5, %v2583_v15  ;;  %v2585_v27 = vpop.f32.mrf.mxu0  ;;  %1511 = sbr.rel (%p2299_p7) target bundleno = 707 (0x2c3), region = 56 }
 0x2ae   : > { %v2586_v49 = vadd.f32 %v2585_v27, %v2584_v19  ;;  %v2697_v30 = vpop.f32.mrf.mxu1 }
 0x2af   : > { %v2698_v31 = vadd.f32 %v2697_v30, %v2696_v24 }
 0x2b1   : > { %v3889_v53 = vadd.f32 %v2698_v31, %v2586_v49 }
 0x2b2   : > { %s4363_s9 = smov (!%p1512_p13, %s1516_s9), %s1515_s27  ;;  %v2383_v38 = vpack.c.bf16 %v3829_v22, %v3827_v21  ;;  %v2388_v28 = vpack.c.bf16 %v3833_v9, %v3831_v25  ;;  %v2393_v57 = vpack.c.bf16 %v3837_v12, %v3835_v35  ;;  %v2398_v60 = vpack.c.bf16 %v3841_v63, %v3839_v55 }
 0x2b3   : > { %p2302_p1 = scmp.lt.s32.totalorder %s4363_s9, 0  ;;  %s1522_s10 = sadd.s32 2, %s4363_s9  ;;  %v2403_v39 = vpack.c.bf16 %v3845_v2, %v3843_v7  ;;  %v2408_v29 = vpack.c.bf16 %v3849_v52, %v3847_v23  ;;  %v2413_v46 = vpack.c.bf16 %v3853_v43, %v3851_v56  ;;  %v2418_v47 = vpack.c.bf16 %v3857_v36, %v3855_v54 }
 0x2b4   : > { %v2423_v50 = vpack.c.bf16 %v3861_v18, %v3859_v10  ;;  %v2428_v51 = vpack.c.bf16 %v3865_v34, %v3863_v26  ;;  %v2433_v33 = vpack.c.bf16 %v3869_v13, %v3867_v42  ;;  %v2438_v58 = vpack.c.bf16 %v3873_v11, %v3871_v1 }
 0x2b5   : > { %s4365_s10 = smov (!%p2302_p1, %s1522_s10), %s4363_s9  ;;  %v2443_v59 = vpack.c.bf16 %v3877_v8, %v3875_v45  ;;  %v2448_v62 = vpack.c.bf16 %v3881_v32, %v3879_v61  ;;  %v2453_v0 = vpack.c.bf16 %v3885_v41, %v3883_v37  ;;  %v2458_v16 = vpack.c.bf16 %v3889_v53, %v3887_v48 }
 0x2b6   : > { %s2303_s11 = sshll.u32 %s4365_s10, 9 }
 0x2b7   : > { %s1525_s25 = sadd.s32 %s2303_s11, %s3418_s26 }
 0x2b8   : > { %s1654_s29 = sshra.s32 %s1525_s25, 3 }
 0x2b9   : > { %s2336_s13 = sshll.u32 %s1654_s29, 2 }
 0x2ba   : > { %s1657_s12 = scalar_lea.vmem [#allocation3], %s2336_s13 }
 0x2bb   : > { %2384 = vst [vmem:[%s1657_s12] sm:$0xff] %v2383_v38   ;;  %2460 = vst [vmem:[%s1657_s12 + $0x8] sm:$0xff] %v2388_v28  }
 0x2bc   : > { %2461 = vst [vmem:[%s1657_s12 + $0x10] sm:$0xff] %v2393_v57   ;;  %2462 = vst [vmem:[%s1657_s12 + $0x18] sm:$0xff] %v2398_v60  }
 0x2bd   : > { %2463 = vst [vmem:[%s1657_s12 + $0x20] sm:$0xff] %v2403_v39   ;;  %2464 = vst [vmem:[%s1657_s12 + $0x28] sm:$0xff] %v2408_v29  }
 0x2be   : > { %2465 = vst [vmem:[%s1657_s12 + $0x30] sm:$0xff] %v2413_v46   ;;  %2466 = vst [vmem:[%s1657_s12 + $0x38] sm:$0xff] %v2418_v47  }
 0x2bf   : > { %2467 = vst [vmem:[%s1657_s12 + $0x40] sm:$0xff] %v2423_v50   ;;  %2468 = vst [vmem:[%s1657_s12 + $0x48] sm:$0xff] %v2428_v51  }
 0x2c0   : > { %2469 = vst [vmem:[%s1657_s12 + $0x50] sm:$0xff] %v2433_v33   ;;  %2470 = vst [vmem:[%s1657_s12 + $0x58] sm:$0xff] %v2438_v58  }
 0x2c1   : > { %2471 = vst [vmem:[%s1657_s12 + $0x60] sm:$0xff] %v2443_v59   ;;  %2472 = vst [vmem:[%s1657_s12 + $0x68] sm:$0xff] %v2448_v62  }
 0x2c2   : > { %2473 = vst [vmem:[%s1657_s12 + $0x70] sm:$0xff] %v2453_v0   ;;  %2474 = vst [vmem:[%s1657_s12 + $0x78] sm:$0xff] %v2458_v16  }
 0x2c3 PF: > { %v1726_v17 = vmul.f32 %v3831_v25, %v3831_v25  ;;  %v1724_v3 = vmul.f32 %v3827_v21, %v3827_v21  ;;  %v1727_v4 = vmul.f32 %v3833_v9, %v3833_v9  ;;  %v1725_v6 = vmul.f32 %v3829_v22, %v3829_v22  ;;  %s1723_s5 = sld [smem:[#allocation6 + %s3721_s30]]  ;;  %s3997_s30 = scalar_lea.vmem [#allocation4], %s3418_s26 }
 0x2c4   : > { %v1729_v40 = vmul.f32 %v3837_v12, %v3837_v12  ;;  %v1728_v20 = vmul.f32 %v3835_v35, %v3835_v35  ;;  %v1731_v14 = vmul.f32 %v3841_v63, %v3841_v63  ;;  %v1730_v15 = vmul.f32 %v3839_v55, %v3839_v55  ;;  %p2337_p2 = scmp.ne.s32.totalorder %s3242_s19, 2 }
 0x2c5   : > { %1760 = vadd.xlane.f32.xlu1 %v1726_v17  ;;  %1756 = vadd.xlane.f32.xlu0 %v1724_v3  ;;  %v1733_v44 = vmul.f32 %v3845_v2, %v3845_v2  ;;  %v1732_v5 = vmul.f32 %v3843_v7, %v3843_v7  ;;  %v1735_v19 = vmul.f32 %v3849_v52, %v3849_v52 }
 0x2c6   : > { %v1734_v24 = vmul.f32 %v3847_v23, %v3847_v23  ;;  %v1737_v27 = vmul.f32 %v3853_v43, %v3853_v43  ;;  %v1736_v49 = vmul.f32 %v3851_v56, %v3851_v56  ;;  %v1739_v30 = vmul.f32 %v3857_v36, %v3857_v36 }
 0x2c7   : > { %v1738_v31 = vmul.f32 %v3855_v54, %v3855_v54  ;;  %v1741_v38 = vmul.f32 %v3861_v18, %v3861_v18  ;;  %v1740_v28 = vmul.f32 %v3859_v10, %v3859_v10  ;;  %v1743_v57 = vmul.f32 %v3865_v34, %v3865_v34 }
 0x2c8   : > { %v1742_v60 = vmul.f32 %v3863_v26, %v3863_v26  ;;  %v1745_v39 = vmul.f32 %v3869_v13, %v3869_v13  ;;  %v1744_v29 = vmul.f32 %v3867_v42, %v3867_v42  ;;  %v1747_v46 = vmul.f32 %v3873_v11, %v3873_v11 }
 0x2c9   : > { %1762 = vadd.xlane.f32.xlu1 %v1727_v4  ;;  %1758 = vadd.xlane.f32.xlu0 %v1725_v6  ;;  %v1746_v47 = vmul.f32 %v3871_v1, %v3871_v1  ;;  %v1749_v50 = vmul.f32 %v3877_v8, %v3877_v8  ;;  %v1748_v51 = vmul.f32 %v3875_v45, %v3875_v45 }
 0x2ca   : > { %v1751_v33 = vmul.f32 %v3881_v32, %v3881_v32  ;;  %v1750_v58 = vmul.f32 %v3879_v61, %v3879_v61  ;;  %v1753_v59 = vmul.f32 %v3885_v41, %v3885_v41  ;;  %v1752_v62 = vmul.f32 %v3883_v37, %v3883_v37 }
 0x2cb   : > { %v1755_v0 = vmul.f32 %v3889_v53, %v3889_v53  ;;  %v1754_v16 = vmul.f32 %v3887_v48, %v3887_v48 }
 0x2cd   : > { %1766 = vadd.xlane.f32.xlu1 %v1729_v40  ;;  %1764 = vadd.xlane.f32.xlu0 %v1728_v20 }
 0x2d1   : > { %1770 = vadd.xlane.f32.xlu1 %v1731_v14  ;;  %1768 = vadd.xlane.f32.xlu0 %v1730_v15 }
 0x2d5   : > { %1774 = vadd.xlane.f32.xlu1 %v1733_v44  ;;  %1772 = vadd.xlane.f32.xlu0 %v1732_v5 }
 0x2d9   : > { %1778 = vadd.xlane.f32.xlu1 %v1735_v19  ;;  %1776 = vadd.xlane.f32.xlu0 %v1734_v24 }
 0x2dd   : > { %1782 = vadd.xlane.f32.xlu1 %v1737_v27  ;;  %1780 = vadd.xlane.f32.xlu0 %v1736_v49 }
 0x2e1   : > { %1786 = vadd.xlane.f32.xlu1 %v1739_v30  ;;  %1784 = vadd.xlane.f32.xlu0 %v1738_v31 }
 0x2e5   : > { %1790 = vadd.xlane.f32.xlu1 %v1741_v38  ;;  %1788 = vadd.xlane.f32.xlu0 %v1740_v28  ;;  %v3993_v28 = vstv %s1723_s5 }
 0x2e9   : > { %1794 = vadd.xlane.f32.xlu1 %v1743_v57  ;;  %1792 = vadd.xlane.f32.xlu0 %v1742_v60 }
 0x2ed   : > { %1798 = vadd.xlane.f32.xlu1 %v1745_v39  ;;  %1796 = vadd.xlane.f32.xlu0 %v1744_v29 }
 0x2f1   : > { %1802 = vadd.xlane.f32.xlu1 %v1747_v46  ;;  %1800 = vadd.xlane.f32.xlu0 %v1746_v47 }
 0x2f5   : > { %1806 = vadd.xlane.f32.xlu1 %v1749_v50  ;;  %1804 = vadd.xlane.f32.xlu0 %v1748_v51  ;;  %v1693_v50 = vld [vmem:[%s3997_s30 + $0x10] sm:$0xff] }
 0x2f9   : > { %1810 = vadd.xlane.f32.xlu1 %v1751_v33  ;;  %1808 = vadd.xlane.f32.xlu0 %v1750_v58  ;;  %v1691_v58 = vld [vmem:[%s3997_s30] sm:$0xff] }
 0x2fd   : > { %1814 = vadd.xlane.f32.xlu1 %v1753_v59  ;;  %1812 = vadd.xlane.f32.xlu0 %v1752_v62 }
 0x301   : > { %1818 = vadd.xlane.f32.xlu1 %v1755_v0  ;;  %1816 = vadd.xlane.f32.xlu0 %v1754_v16 }
 0x34e   : > { %v1761_v17 = vpop.xlane.xlu1 %1760  ;;  %v1757_v3 = vpop.xlane.xlu0 %1756 }
 0x34f   : > { %v1822_v4 = vmax.f32 %v1761_v17, 1e-24  ;;  %v1820_v6 = vmax.f32 %v1757_v3, 1e-24 }
 0x351   : > { %2991 = vrsqrt.f32 %v1822_v4 }
 0x352   : > { %2993 = vrsqrt.f32 %v1820_v6  ;;  %v1763_v40 = vpop.xlane.xlu1 %1762  ;;  %v1759_v20 = vpop.xlane.xlu0 %1758 }
 0x353   : > { %v1823_v14 = vmax.f32 %v1763_v40, 1e-24  ;;  %v1821_v15 = vmax.f32 %v1759_v20, 1e-24  ;;  %v1694_v40 = vld [vmem:[%s3997_s30 + $0x18] sm:$0xff] }
 0x355   : > { %2995 = vrsqrt.f32 %v1823_v14 }
 0x356   : > { %2997 = vrsqrt.f32 %v1821_v15  ;;  %v1767_v44 = vpop.xlane.xlu1 %1766  ;;  %v1765_v5 = vpop.xlane.xlu0 %1764  ;;  %v1692_v15 = vld [vmem:[%s3997_s30 + $0x8] sm:$0xff] }
 0x357   : > { %v1825_v19 = vmax.f32 %v1767_v44, 1e-24  ;;  %v1824_v24 = vmax.f32 %v1765_v5, 1e-24 }
 0x359   : > { %2999 = vrsqrt.f32 %v1825_v19 }
 0x35a   : > { %3001 = vrsqrt.f32 %v1824_v24  ;;  %v1771_v27 = vpop.xlane.xlu1 %1770  ;;  %v1769_v49 = vpop.xlane.xlu0 %1768 }
 0x35b   : > { %v1827_v30 = vmax.f32 %v1771_v27, 1e-24  ;;  %v1826_v31 = vmax.f32 %v1769_v49, 1e-24 }
 0x35d   : > { %3003 = vrsqrt.f32 %v1827_v30 }
 0x35e   : > { %v2992_v38 = vpop.eup %2991  ;;  %3005 = vrsqrt.f32 %v1826_v31  ;;  %v1775_v57 = vpop.xlane.xlu1 %1774 }
 0x35f   : > { %v1773_v60 = vpop.xlane.xlu0 %1772  ;;  %v2994_v39 = vpop.eup %2993  ;;  %v1886_v29 = vmul.f32 %v2992_v38, %v3831_v25  ;;  %v1829_v46 = vmax.f32 %v1775_v57, 1e-24  ;;  %v1696_v38 = vld [vmem:[%s3997_s30 + $0x28] sm:$0xff] }
 0x360   : > { %v1828_v47 = vmax.f32 %v1773_v60, 1e-24  ;;  %v1884_v51 = vmul.f32 %v2994_v39, %v3827_v21  ;;  %v1695_v39 = vld [vmem:[%s3997_s30 + $0x20] sm:$0xff] }
 0x361   : > { %v1919_v33 = vmul.f32 %v3993_v28, %v1886_v29  ;;  %3007 = vrsqrt.f32 %v1829_v46 }
 0x362   : > { %v2996_v59 = vpop.eup %2995  ;;  %v1917_v62 = vmul.f32 %v3993_v28, %v1884_v51  ;;  %3009 = vrsqrt.f32 %v1828_v47  ;;  %v1779_v25 = vpop.xlane.xlu1 %1778 }
 0x363   : > { %v1777_v0 = vpop.xlane.xlu0 %1776  ;;  %v2998_v16 = vpop.eup %2997  ;;  %v4004_v17 = vadd.f32 %v1919_v33, %v1693_v50  ;;  %v1887_v3 = vmul.f32 %v2996_v59, %v3833_v9  ;;  %v1831_v4 = vmax.f32 %v1779_v25, 1e-24 }
 0x364   : > { %v1830_v21 = vmax.f32 %v1777_v0, 1e-24  ;;  %v4007_v6 = vadd.f32 %v1917_v62, %v1691_v58  ;;  %v1885_v20 = vmul.f32 %v2998_v16, %v3829_v22  ;;  %v1698_v62 = vld [vmem:[%s3997_s30 + $0x38] sm:$0xff]  ;;  %v1697_v16 = vld [vmem:[%s3997_s30 + $0x30] sm:$0xff] }
 0x365   : > { %1983 = vst [vmem:[%s3997_s30 + $0x10] sm:$0xff] %v4004_v17  ;;  %v1920_v14 = vmul.f32 %v3993_v28, %v1887_v3  ;;  %3011 = vrsqrt.f32 %v1831_v4 }
 0x366   : > { %v3000_v44 = vpop.eup %2999  ;;  %1981 = vst [vmem:[%s3997_s30] sm:$0xff] %v4007_v6  ;;  %v1918_v9 = vmul.f32 %v3993_v28, %v1885_v20  ;;  %3013 = vrsqrt.f32 %v1830_v21  ;;  %v1783_v5 = vpop.xlane.xlu1 %1782 }
 0x367   : > { %v1781_v19 = vpop.xlane.xlu0 %1780  ;;  %v3002_v24 = vpop.eup %3001  ;;  %v4018_v22 = vadd.f32 %v1920_v14, %v1694_v40  ;;  %v1889_v27 = vmul.f32 %v3000_v44, %v3837_v12  ;;  %v1833_v49 = vmax.f32 %v1783_v5, 1e-24 }
 0x368   : > { %v1832_v30 = vmax.f32 %v1781_v19, 1e-24  ;;  %v4021_v31 = vadd.f32 %v1918_v9, %v1692_v15  ;;  %v1888_v57 = vmul.f32 %v3002_v24, %v3835_v35  ;;  %v1700_v9 = vld [vmem:[%s3997_s30 + $0x48] sm:$0xff]  ;;  %v1699_v24 = vld [vmem:[%s3997_s30 + $0x40] sm:$0xff] }
 0x369   : > { %1984 = vst [vmem:[%s3997_s30 + $0x18] sm:$0xff] %v4018_v22  ;;  %v1922_v60 = vmul.f32 %v3993_v28, %v1889_v27  ;;  %3015 = vrsqrt.f32 %v1833_v49 }
 0x36a   : > { %v3004_v29 = vpop.eup %3003  ;;  %1982 = vst [vmem:[%s3997_s30 + $0x8] sm:$0xff] %v4021_v31  ;;  %v1921_v12 = vmul.f32 %v3993_v28, %v1888_v57  ;;  %3017 = vrsqrt.f32 %v1832_v30  ;;  %v1787_v46 = vpop.xlane.xlu1 %1786 }
 0x36b   : > { %v1785_v47 = vpop.xlane.xlu0 %1784  ;;  %v3006_v50 = vpop.eup %3005  ;;  %v4032_v35 = vadd.f32 %v1922_v60, %v1696_v38  ;;  %v1891_v51 = vmul.f32 %v3004_v29, %v3841_v63  ;;  %v1835_v33 = vmax.f32 %v1787_v46, 1e-24 }
 0x36c   : > { %v1834_v58 = vmax.f32 %v1785_v47, 1e-24  ;;  %v4035_v59 = vadd.f32 %v1921_v12, %v1695_v39  ;;  %v1890_v25 = vmul.f32 %v3006_v50, %v3839_v55  ;;  %v1702_v12 = vld [vmem:[%s3997_s30 + $0x58] sm:$0xff]  ;;  %v1701_v50 = vld [vmem:[%s3997_s30 + $0x50] sm:$0xff] }
 0x36d   : > { %1986 = vst [vmem:[%s3997_s30 + $0x28] sm:$0xff] %v4032_v35  ;;  %v1924_v0 = vmul.f32 %v3993_v28, %v1891_v51  ;;  %3019 = vrsqrt.f32 %v1835_v33 }
 0x36e   : > { %v3008_v3 = vpop.eup %3007  ;;  %1985 = vst [vmem:[%s3997_s30 + $0x20] sm:$0xff] %v4035_v59  ;;  %v1923_v63 = vmul.f32 %v3993_v28, %v1890_v25  ;;  %3021 = vrsqrt.f32 %v1834_v58  ;;  %v1791_v4 = vpop.xlane.xlu1 %1790 }
 0x36f   : > { %v1789_v21 = vpop.xlane.xlu0 %1788  ;;  %v3010_v40 = vpop.eup %3009  ;;  %v4046_v55 = vadd.f32 %v1924_v0, %v1698_v62  ;;  %v1893_v20 = vmul.f32 %v3008_v3, %v3845_v2  ;;  %v1837_v14 = vmax.f32 %v1791_v4, 1e-24 }
 0x370   : > { %v1836_v15 = vmax.f32 %v1789_v21, 1e-24  ;;  %v4049_v44 = vadd.f32 %v1923_v63, %v1697_v16  ;;  %v1892_v5 = vmul.f32 %v3010_v40, %v3843_v7  ;;  %v1704_v63 = vld [vmem:[%s3997_s30 + $0x68] sm:$0xff]  ;;  %v1703_v40 = vld [vmem:[%s3997_s30 + $0x60] sm:$0xff] }
 0x371   : > { %1988 = vst [vmem:[%s3997_s30 + $0x38] sm:$0xff] %v4046_v55  ;;  %v1926_v19 = vmul.f32 %v3993_v28, %v1893_v20  ;;  %3023 = vrsqrt.f32 %v1837_v14 }
 0x372   : > { %v3012_v27 = vpop.eup %3011  ;;  %1987 = vst [vmem:[%s3997_s30 + $0x30] sm:$0xff] %v4049_v44  ;;  %v1925_v2 = vmul.f32 %v3993_v28, %v1892_v5  ;;  %3025 = vrsqrt.f32 %v1836_v15  ;;  %v1795_v49 = vpop.xlane.xlu1 %1794 }
 0x373   : > { %v1793_v30 = vpop.xlane.xlu0 %1792  ;;  %v3014_v38 = vpop.eup %3013  ;;  %v4060_v7 = vadd.f32 %v1926_v19, %v1700_v9  ;;  %v1895_v57 = vmul.f32 %v3012_v27, %v3849_v52  ;;  %v1839_v60 = vmax.f32 %v1795_v49, 1e-24 }
 0x374   : > { %v1838_v39 = vmax.f32 %v1793_v30, 1e-24  ;;  %v4063_v29 = vadd.f32 %v1925_v2, %v1699_v24  ;;  %v1894_v46 = vmul.f32 %v3014_v38, %v3847_v23  ;;  %v1706_v2 = vld [vmem:[%s3997_s30 + $0x78] sm:$0xff]  ;;  %v1705_v38 = vld [vmem:[%s3997_s30 + $0x70] sm:$0xff] }
 0x375   : > { %1990 = vst [vmem:[%s3997_s30 + $0x48] sm:$0xff] %v4060_v7  ;;  %v1928_v47 = vmul.f32 %v3993_v28, %v1895_v57  ;;  %3027 = vrsqrt.f32 %v1839_v60 }
 0x376   : > { %v3016_v51 = vpop.eup %3015  ;;  %1989 = vst [vmem:[%s3997_s30 + $0x40] sm:$0xff] %v4063_v29  ;;  %v1927_v52 = vmul.f32 %v3993_v28, %v1894_v46  ;;  %3029 = vrsqrt.f32 %v1838_v39  ;;  %v1799_v33 = vpop.xlane.xlu1 %1798 }
 0x377   : > { %v1797_v58 = vpop.xlane.xlu0 %1796  ;;  %v3018_v62 = vpop.eup %3017  ;;  %v4074_v23 = vadd.f32 %v1928_v47, %v1702_v12  ;;  %v1897_v25 = vmul.f32 %v3016_v51, %v3853_v43  ;;  %v1841_v0 = vmax.f32 %v1799_v33, 1e-24 }
 0x378   : > { %v1840_v16 = vmax.f32 %v1797_v58, 1e-24  ;;  %v4077_v3 = vadd.f32 %v1927_v52, %v1701_v50  ;;  %v1896_v4 = vmul.f32 %v3018_v62, %v3851_v56  ;;  %v1708_v52 = vld [vmem:[%s3997_s30 + $0x88] sm:$0xff]  ;;  %v1707_v62 = vld [vmem:[%s3997_s30 + $0x80] sm:$0xff] }
 0x379   : > { %1992 = vst [vmem:[%s3997_s30 + $0x58] sm:$0xff] %v4074_v23  ;;  %v1930_v21 = vmul.f32 %v3993_v28, %v1897_v25  ;;  %3031 = vrsqrt.f32 %v1841_v0 }
 0x37a   : > { %v3020_v20 = vpop.eup %3019  ;;  %1991 = vst [vmem:[%s3997_s30 + $0x50] sm:$0xff] %v4077_v3  ;;  %v1929_v43 = vmul.f32 %v3993_v28, %v1896_v4  ;;  %3033 = vrsqrt.f32 %v1840_v16  ;;  %v1803_v14 = vpop.xlane.xlu1 %1802 }
 0x37b   : > { %v1801_v15 = vpop.xlane.xlu0 %1800  ;;  %v3022_v9 = vpop.eup %3021  ;;  %v4088_v56 = vadd.f32 %v1930_v21, %v1704_v63  ;;  %v1899_v5 = vmul.f32 %v3020_v20, %v3857_v36  ;;  %v1843_v19 = vmax.f32 %v1803_v14, 1e-24 }
 0x37c   : > { %v1842_v24 = vmax.f32 %v1801_v15, 1e-24  ;;  %v4091_v27 = vadd.f32 %v1929_v43, %v1703_v40  ;;  %v1898_v49 = vmul.f32 %v3022_v9, %v3855_v54  ;;  %v1710_v43 = vld [vmem:[%s3997_s30 + $0x98] sm:$0xff]  ;;  %v1709_v9 = vld [vmem:[%s3997_s30 + $0x90] sm:$0xff] }
 0x37d   : > { %1994 = vst [vmem:[%s3997_s30 + $0x68] sm:$0xff] %v4088_v56  ;;  %v1932_v30 = vmul.f32 %v3993_v28, %v1899_v5  ;;  %3035 = vrsqrt.f32 %v1843_v19 }
 0x37e   : > { %v3024_v57 = vpop.eup %3023  ;;  %1993 = vst [vmem:[%s3997_s30 + $0x60] sm:$0xff] %v4091_v27  ;;  %v1931_v36 = vmul.f32 %v3993_v28, %v1898_v49  ;;  %3037 = vrsqrt.f32 %v1842_v24  ;;  %v1807_v60 = vpop.xlane.xlu1 %1806 }
 0x37f   : > { %v1805_v39 = vpop.xlane.xlu0 %1804  ;;  %v3026_v12 = vpop.eup %3025  ;;  %v4102_v54 = vadd.f32 %v1932_v30, %v1706_v2  ;;  %v1901_v46 = vmul.f32 %v3024_v57, %v3861_v18  ;;  %v1845_v47 = vmax.f32 %v1807_v60, 1e-24 }
 0x380   : > { %v1844_v50 = vmax.f32 %v1805_v39, 1e-24  ;;  %v4105_v51 = vadd.f32 %v1931_v36, %v1705_v38  ;;  %v1900_v33 = vmul.f32 %v3026_v12, %v3859_v10  ;;  %v1712_v36 = vld [vmem:[%s3997_s30 + $0xa8] sm:$0xff]  ;;  %v1711_v12 = vld [vmem:[%s3997_s30 + $0xa0] sm:$0xff] }
 0x381   : > { %1996 = vst [vmem:[%s3997_s30 + $0x78] sm:$0xff] %v4102_v54  ;;  %v1934_v58 = vmul.f32 %v3993_v28, %v1901_v46  ;;  %3039 = vrsqrt.f32 %v1845_v47 }
 0x382   : > { %v3028_v25 = vpop.eup %3027  ;;  %1995 = vst [vmem:[%s3997_s30 + $0x70] sm:$0xff] %v4105_v51  ;;  %v1933_v18 = vmul.f32 %v3993_v28, %v1900_v33  ;;  %3041 = vrsqrt.f32 %v1844_v50  ;;  %v1811_v0 = vpop.xlane.xlu1 %1810 }
 0x383   : > { %v1809_v16 = vpop.xlane.xlu0 %1808  ;;  %v3030_v63 = vpop.eup %3029  ;;  %v4116_v10 = vadd.f32 %v1934_v58, %v1708_v52  ;;  %v1903_v4 = vmul.f32 %v3028_v25, %v3865_v34  ;;  %v1847_v21 = vmax.f32 %v1811_v0, 1e-24 }
 0x384   : > { %v1846_v40 = vmax.f32 %v1809_v16, 1e-24  ;;  %v4119_v20 = vadd.f32 %v1933_v18, %v1707_v62  ;;  %v1902_v14 = vmul.f32 %v3030_v63, %v3863_v26  ;;  %v1714_v18 = vld [vmem:[%s3997_s30 + $0xb8] sm:$0xff]  ;;  %v1713_v63 = vld [vmem:[%s3997_s30 + $0xb0] sm:$0xff] }
 0x385   : > { %1998 = vst [vmem:[%s3997_s30 + $0x88] sm:$0xff] %v4116_v10  ;;  %v1936_v15 = vmul.f32 %v3993_v28, %v1903_v4  ;;  %3043 = vrsqrt.f32 %v1847_v21 }
 0x386   : > { %v3032_v5 = vpop.eup %3031  ;;  %1997 = vst [vmem:[%s3997_s30 + $0x80] sm:$0xff] %v4119_v20  ;;  %v1935_v34 = vmul.f32 %v3993_v28, %v1902_v14  ;;  %3045 = vrsqrt.f32 %v1846_v40  ;;  %v1815_v19 = vpop.xlane.xlu1 %1814  ;;  %v1716_v14 = vld [vmem:[%s3997_s30 + $0xc8] sm:$0xff] }
 0x387   : > { %v1813_v24 = vpop.xlane.xlu0 %1812  ;;  %v3034_v2 = vpop.eup %3033  ;;  %v4130_v26 = vadd.f32 %v1936_v15, %v1710_v43  ;;  %v1905_v49 = vmul.f32 %v3032_v5, %v3869_v13  ;;  %v1849_v30 = vmax.f32 %v1815_v19, 1e-24  ;;  %v1715_v5 = vld [vmem:[%s3997_s30 + $0xc0] sm:$0xff] }
 0x388   : > { %v1848_v38 = vmax.f32 %v1813_v24, 1e-24  ;;  %v4133_v57 = vadd.f32 %v1935_v34, %v1709_v9  ;;  %v1904_v60 = vmul.f32 %v3034_v2, %v3867_v42 }
 0x389   : > { %2000 = vst [vmem:[%s3997_s30 + $0x98] sm:$0xff] %v4130_v26  ;;  %v1938_v39 = vmul.f32 %v3993_v28, %v1905_v49  ;;  %3047 = vrsqrt.f32 %v1849_v30 }
 0x38a   : > { %v3036_v46 = vpop.eup %3035  ;;  %1999 = vst [vmem:[%s3997_s30 + $0x90] sm:$0xff] %v4133_v57  ;;  %v1937_v13 = vmul.f32 %v3993_v28, %v1904_v60  ;;  %3049 = vrsqrt.f32 %v1848_v38  ;;  %v1819_v47 = vpop.xlane.xlu1 %1818 }
 0x38b   : > { %v1817_v50 = vpop.xlane.xlu0 %1816  ;;  %v3038_v52 = vpop.eup %3037  ;;  %v4144_v42 = vadd.f32 %v1938_v39, %v1712_v36  ;;  %v1907_v33 = vmul.f32 %v3036_v46, %v3873_v11  ;;  %v1851_v58 = vmax.f32 %v1819_v47, 1e-24  ;;  %v1717_v36 = vld [vmem:[%s3997_s30 + $0xd0] sm:$0xff]  ;;  %v1720_v47 = vld [vmem:[%s3997_s30 + $0xe8] sm:$0xff] }
 0x38c   : > { %v1850_v62 = vmax.f32 %v1817_v50, 1e-24  ;;  %v4147_v25 = vadd.f32 %v1937_v13, %v1711_v12  ;;  %v1906_v0 = vmul.f32 %v3038_v52, %v3871_v1  ;;  %v1719_v52 = vld [vmem:[%s3997_s30 + $0xe0] sm:$0xff] }
 0x38d   : > { %2002 = vst [vmem:[%s3997_s30 + $0xa8] sm:$0xff] %v4144_v42  ;;  %v1940_v16 = vmul.f32 %v3993_v28, %v1907_v33  ;;  %3051 = vrsqrt.f32 %v1851_v58 }
 0x38e   : > { %v3040_v4 = vpop.eup %3039  ;;  %2001 = vst [vmem:[%s3997_s30 + $0xa0] sm:$0xff] %v4147_v25  ;;  %v1939_v11 = vmul.f32 %v3993_v28, %v1906_v0  ;;  %3053 = vrsqrt.f32 %v1850_v62 }
 0x38f   : > { %v3042_v21 = vpop.eup %3041  ;;  %v4158_v40 = vadd.f32 %v1940_v16, %v1714_v18  ;;  %v1909_v1 = vmul.f32 %v3040_v4, %v3877_v8  ;;  %v1722_v16 = vld [vmem:[%s3997_s30 + $0xf8] sm:$0xff]  ;;  %v1721_v4 = vld [vmem:[%s3997_s30 + $0xf0] sm:$0xff] }
 0x390   : > { %v4161_v43 = vadd.f32 %v1939_v11, %v1713_v63  ;;  %v1908_v15 = vmul.f32 %v3042_v21, %v3875_v45  ;;  %v1718_v45 = vld [vmem:[%s3997_s30 + $0xd8] sm:$0xff] }
 0x391   : > { %2004 = vst [vmem:[%s3997_s30 + $0xb8] sm:$0xff] %v4158_v40  ;;  %v1942_v9 = vmul.f32 %v3993_v28, %v1909_v1 }
 0x392   : > { %v3044_v34 = vpop.eup %3043  ;;  %2003 = vst [vmem:[%s3997_s30 + $0xb0] sm:$0xff] %v4161_v43  ;;  %v1941_v19 = vmul.f32 %v3993_v28, %v1908_v15 }
 0x393   : > { %v3046_v24 = vpop.eup %3045  ;;  %v4172_v8 = vadd.f32 %v1942_v9, %v1716_v14  ;;  %v1911_v2 = vmul.f32 %v3044_v34, %v3881_v32 }
 0x394   : > { %v1973_v49 = vadd.f32 %v1941_v19, %v1715_v5  ;;  %v1910_v30 = vmul.f32 %v3046_v24, %v3879_v61 }
 0x395   : > { %2006 = vst [vmem:[%s3997_s30 + $0xc8] sm:$0xff] %v4172_v8  ;;  %v1944_v38 = vmul.f32 %v3993_v28, %v1911_v2 }
 0x396   : > { %v3048_v60 = vpop.eup %3047  ;;  %2005 = vst [vmem:[%s3997_s30 + $0xc0] sm:$0xff] %v1973_v49  ;;  %v1943_v39 = vmul.f32 %v3993_v28, %v1910_v30 }
 0x397   : > { %v3050_v12 = vpop.eup %3049  ;;  %v1976_v46 = vadd.f32 %v1944_v38, %v1718_v45  ;;  %v1913_v32 = vmul.f32 %v3048_v60, %v3885_v41 }
 0x398   : > { %v1975_v13 = vadd.f32 %v1943_v39, %v1717_v36  ;;  %v1912_v61 = vmul.f32 %v3050_v12, %v3883_v37 }
 0x399   : > { %2008 = vst [vmem:[%s3997_s30 + $0xd8] sm:$0xff] %v1976_v46  ;;  %v1946_v50 = vmul.f32 %v3993_v28, %v1913_v32 }
 0x39a   : > { %v3052_v33 = vpop.eup %3051  ;;  %2007 = vst [vmem:[%s3997_s30 + $0xd0] sm:$0xff] %v1975_v13  ;;  %v1945_v58 = vmul.f32 %v3993_v28, %v1912_v61 }
 0x39b   : > { %v3054_v62 = vpop.eup %3053  ;;  %v1978_v18 = vadd.f32 %v1946_v50, %v1720_v47  ;;  %v1915_v41 = vmul.f32 %v3052_v33, %v3889_v53 }
 0x39c   : > { %v1977_v0 = vadd.f32 %v1945_v58, %v1719_v52  ;;  %v1914_v63 = vmul.f32 %v3054_v62, %v3887_v48 }
 0x39d   : > { %2010 = vst [vmem:[%s3997_s30 + $0xe8] sm:$0xff] %v1978_v18  ;;  %v1948_v37 = vmul.f32 %v3993_v28, %v1915_v41 }
 0x39e   : > { %2009 = vst [vmem:[%s3997_s30 + $0xe0] sm:$0xff] %v1977_v0  ;;  %v1947_v11 = vmul.f32 %v3993_v28, %v1914_v63  ;;  %2016 = sbr.rel (%p2337_p2) target bundleno = 947 (0x3b3), region = 60 }
 0x39f   : > { %v1980_v21 = vadd.f32 %v1948_v37, %v1722_v16 }
 0x3a0   : > { %v1979_v1 = vadd.f32 %v1947_v11, %v1721_v4 }
 0x3a1   : > { %2012 = vst [vmem:[%s3997_s30 + $0xf8] sm:$0xff] %v1980_v21 }
 0x3a2   : > { %2011 = vst [vmem:[%s3997_s30 + $0xf0] sm:$0xff] %v1979_v1 }
 0x3a3   : > { %2017 = vst [vmem:[%s3448_s23] sm:$0xff] %v4007_v6  ;;  %2018 = vst [vmem:[%s3448_s23 + $0x8] sm:$0xff] %v4021_v31 }
 0x3a4   : > { %2019 = vst [vmem:[%s3448_s23 + $0x10] sm:$0xff] %v4004_v17  ;;  %2020 = vst [vmem:[%s3448_s23 + $0x18] sm:$0xff] %v4018_v22 }
 0x3a5   : > { %2021 = vst [vmem:[%s3448_s23 + $0x20] sm:$0xff] %v4035_v59  ;;  %2022 = vst [vmem:[%s3448_s23 + $0x28] sm:$0xff] %v4032_v35 }
 0x3a6   : > { %2023 = vst [vmem:[%s3448_s23 + $0x30] sm:$0xff] %v4049_v44  ;;  %2024 = vst [vmem:[%s3448_s23 + $0x38] sm:$0xff] %v4046_v55 }
 0x3a7   : > { %2025 = vst [vmem:[%s3448_s23 + $0x40] sm:$0xff] %v4063_v29  ;;  %2026 = vst [vmem:[%s3448_s23 + $0x48] sm:$0xff] %v4060_v7 }
 0x3a8   : > { %2027 = vst [vmem:[%s3448_s23 + $0x50] sm:$0xff] %v4077_v3  ;;  %2028 = vst [vmem:[%s3448_s23 + $0x58] sm:$0xff] %v4074_v23 }
 0x3a9   : > { %2029 = vst [vmem:[%s3448_s23 + $0x60] sm:$0xff] %v4091_v27  ;;  %2030 = vst [vmem:[%s3448_s23 + $0x68] sm:$0xff] %v4088_v56 }
 0x3aa   : > { %2031 = vst [vmem:[%s3448_s23 + $0x70] sm:$0xff] %v4105_v51  ;;  %2032 = vst [vmem:[%s3448_s23 + $0x78] sm:$0xff] %v4102_v54 }
 0x3ab   : > { %2033 = vst [vmem:[%s3448_s23 + $0x80] sm:$0xff] %v4119_v20  ;;  %2034 = vst [vmem:[%s3448_s23 + $0x88] sm:$0xff] %v4116_v10 }
 0x3ac   : > { %2035 = vst [vmem:[%s3448_s23 + $0x90] sm:$0xff] %v4133_v57  ;;  %2036 = vst [vmem:[%s3448_s23 + $0x98] sm:$0xff] %v4130_v26 }
 0x3ad   : > { %2037 = vst [vmem:[%s3448_s23 + $0xa0] sm:$0xff] %v4147_v25  ;;  %2038 = vst [vmem:[%s3448_s23 + $0xa8] sm:$0xff] %v4144_v42 }
 0x3ae   : > { %2039 = vst [vmem:[%s3448_s23 + $0xb0] sm:$0xff] %v4161_v43  ;;  %2040 = vst [vmem:[%s3448_s23 + $0xb8] sm:$0xff] %v4158_v40 }
 0x3af   : > { %2041 = vst [vmem:[%s3448_s23 + $0xc0] sm:$0xff] %v1973_v49  ;;  %2042 = vst [vmem:[%s3448_s23 + $0xc8] sm:$0xff] %v4172_v8 }
 0x3b0   : > { %2043 = vst [vmem:[%s3448_s23 + $0xd0] sm:$0xff] %v1975_v13  ;;  %2044 = vst [vmem:[%s3448_s23 + $0xd8] sm:$0xff] %v1976_v46 }
 0x3b1   : > { %2045 = vst [vmem:[%s3448_s23 + $0xe0] sm:$0xff] %v1977_v0  ;;  %2046 = vst [vmem:[%s3448_s23 + $0xe8] sm:$0xff] %v1978_v18 }
 0x3b2   : > { %2047 = vst [vmem:[%s3448_s23 + $0xf0] sm:$0xff] %v1979_v1  ;;  %2048 = vst [vmem:[%s3448_s23 + $0xf8] sm:$0xff] %v1980_v21 }
 0x3b3 PF: > { %s2379_s19 = sshll.u32 %s3238_s18, 12  ;;  %s2063_s0 = sshll.u32 %s3448_s23, 4  ;;  %s4266_s0 = int_to_ptr.vmem [resolvable:$true] %s2063_s0 }
 0x3b4   : > { %s4263_s7 = scalar_lea.hbm %s4323_s4, %s2379_s19  ;;  %s2050_s8 = scalar_lea.sflag [#allocation8], %s3405_s6 }
 0x3b5   : > { %s3146_s27 = scalar_lea.vmem %s4266_s0, 4096  ;;  %p4340_p5 = scmp.ne.s32.totalorder %s4330_s28, 0 }
 0x3b6   : > { %p3147_p4 = scmp.ne.s32.totalorder %s4266_s0, %s3146_s27  ;;  %s3263_s9 = smov [#allocation11]  }
 0x3b7   : > { %s3150_s10 = sshll.u32 %s3263_s9, 4  ;;  %s3151_s10 = int_to_ptr.vmem [resolvable:$false] %s3150_s10 }
 0x3b8   : > { %p3148_p6 = pnand %p3147_p4, %p4340_p5  ;;  %s3152_s18 = scalar_lea.vmem %s3151_s10, 8192 }
 0x3b9   : > { %p3153_p12 = scmp.lt.s32.totalorder %s4266_s0, %s3151_s10  ;;  %p3154_p10 = scmp.lt.s32.totalorder %s3152_s18, %s3146_s27 }
 0x3ba   : > { %p3149_p3 = pneg %p3148_p6 }
 0x3bb   : > { %p3155_p11 = por %p3154_p10, %p3153_p12 }
 0x3bd   : > { %p3156_p8 = pnand %p3155_p11, %p3149_p3 }
 0x3bf   : > { %3159 = shalt.err (!%p3156_p8)
}
 0x3c0   : > { %s3160_s23 = scalar_lea.hbm %s4263_s7, 4096  ;;  %s3164_s29 = scalar_lea.hbm %s4323_s4, 8192 }
 0x3c1   : > { %p3161_p9 = scmp.ne.s32.totalorder %s4263_s7, %s3160_s23  ;;  %p3165_p13 = scmp.lt.s32.totalorder %s4263_s7, %s4323_s4 }
 0x3c2   : > { %p3166_p1 = scmp.lt.s32.totalorder %s3164_s29, %s3160_s23 }
 0x3c3   : > { %p3162_p0 = pnand %p3161_p9, %p4340_p5 }
 0x3c4   : > { %p3167_p2 = por %p3166_p1, %p3165_p13 }
 0x3c5   : > { %p3163_p7 = pneg %p3162_p0 }
 0x3c7   : > { %p3168_p4 = pnand %p3167_p2, %p3163_p7 }
 0x3c9   : > { %3171 = shalt.err (!%p3168_p4)
}
 0x3ca   : > { %s3264_s5 = smov 128   ;;  %s3265_s30 = smov 8  }
 0x3cb   : > { %2710 = dma.vmem_to_hbm [thread:$0]  (%p4340_p5), %s4266_s0, 4096, %s4263_s7, %s2050_s8, %s3264_s5, %s3264_s5, %s3265_s30  }
 0x3cc PF: > { %s4341_s19 = sld [smem:[#allocation23_spill]]  ;;  %p2727_p6 = scmp.ge.s32.totalorder %s3254_s22, 2 }
 0x3cd   : > { %s2078_s26 = sand.u32 1, %s3226_s15  }
 0x3ce   : > { %s2079_s24 = scalar_lea.sflag [#allocation8], %s2078_s26 }
 0x3d2   : > { %p4342_p3 = scmp.ne.s32.totalorder %s4341_s19, 0 }
 0x3d4   : > { %p2721_p12 = pnand %p2727_p6, %p4342_p3 }
 0x3d6   : > { %p2722_p10 = pneg %p2721_p12 }
 0x3d8   : > { %3221 = dma.done.wait (%p2722_p10), %s2079_s24, 4096  }
 0x3d9   : > { %3223 = vsyncadd (%p2722_p10), %s2079_s24, 4294963200  ;;  %s21_s22 = sadd.s32 1, %s3254_s22   ;;  %s4343_s28 = sld [smem:[#allocation24_spill]] }
 0x3da   : > { %p18_p11 = scmp.ge.s32.totalorder %s21_s22, 8   ;;  %s4344_s6 = sld [smem:[#allocation25_spill]] }
 0x3db   : > { %s4345_s15 = smov %s3230_s16  ;;  %s4346_s16 = smov %s3234_s17 }
 0x3dc   : > { %s4347_s17 = smov %s3388_s14  ;;  %s4348_s18 = smov %s3246_s20 }
 0x3dd   : > { %s4349_s19 = smov %s3250_s21  ;;  %20 = sbr.rel (!%p18_p11) target bundleno = 10 (0xa), region = 110 }
 0x3df   : > { %s4350_s20 = smov %s4343_s28 }
 0x3e0   : > { %s4351_s21 = smov %s4344_s6 }
 0x3e2   :  { %2084 = vsyncpa [#allocation7], 1 }
 0x3e3   :  { %2086 = vsyncpa [#allocation7 + $0x1], 1 }
 0x3e4   :  { %2087 = vsyncpa [#allocation8], 1 }
 0x3e5   :  { %2089 = vsyncpa [#allocation8 + $0x1], 1 }
 0x3e6   :  { %2090 = vsyncpa [#allocation9], 1 }
 0x3e7   :  { %2092 = vsyncpa [#allocation9 + $0x1], 1 }
 0x3e8   :  { %2093 = vsyncmov [#allocation5] }
 0x3eb   :  { %s2094_s7 = vpop.sfrf %2093 }
 0x3ec   :  { %p2343_p5 = scmp.ne.s32.totalorder %s2094_s7, 0 }
 0x3ee   :  { %2098 = shalt.err (%p2343_p5)  }
 0x3ef   :  { %2100 = vsyncmov [#allocation5 + $0x1] }
 0x3f2   :  { %s2101_s14 = vpop.sfrf %2100 }
 0x3f3   :  { %p2344_p8 = scmp.ne.s32.totalorder %s2101_s14, 0 }
 0x3f5   :  { %2105 = shalt.err (%p2344_p8)  }

</bundles_post_ra>
